<compile_context>
chip_gen: v7x
topology: tpu7x:2x2x1
jax: 0.10.0
libtpu: 0.0.40
codegen_flags: <defaults>
</compile_context>

<pallas_src>
import jax
import jax.numpy as jnp
from jax import lax
from jax.experimental import pallas as pl
from jax.experimental.pallas import tpu as pltpu
import functools


def _cost_attention_kernel(q_ref, k_ref, v_ref, w_ref, b_ref, o_ref, *, scale):
    # q_ref: [C, tq]   (query tile of one batch element)
    # k_ref: [C, N]    (all keys of this batch element)
    # v_ref: [C, N]    (all values of this batch element)
    # w_ref: [C, C]    1x1-conv weight;  b_ref: [C, 1] bias
    # o_ref: [C, tq]
    q = q_ref[...]
    k = k_ref[...]
    v = v_ref[...]
    w = w_ref[...]
    b = b_ref[...]

    # 1x1 conv == per-pixel channel mix: [C,C] @ [C,tq] + bias; fold the C^-0.5 scale here
    # (C*tq elements) instead of on the [tq, N] attention slab.
    qp = (jnp.dot(w, q, preferred_element_type=jnp.float32) + b) * scale       # [C, tq] f32

    # attn[n, m] = sum_c qp[c, n] * k[c, m]  -- contract the C axis directly.
    attn = lax.dot_general(
        qp, k,
        dimension_numbers=(((0,), (0,)), ((), ())),
        preferred_element_type=jnp.float32)                                    # [tq, N] f32

    # Softmax over keys with deferred normalization.  Max/exp stay in f32 (XLU / EUP slots,
    # effectively free next to the elementwise work); e <= 1 after max-subtraction.
    m = jnp.max(attn, axis=-1, keepdims=True)                                  # [tq, 1]
    e = jnp.exp(attn - m)                                                      # [tq, N]

    # Row sums via a ones-row matmul: result is [1, tq] (already lane-indexed by the query),
    # so the normalizer broadcasts over the [C, tq] context with no relayout.  MXU slack makes
    # this free.
    l_row = lax.dot_general(
        jnp.ones((1, e.shape[-1]), jnp.float32), e,
        dimension_numbers=(((1,), (1,)), ((), ())),
        preferred_element_type=jnp.float32)                                    # [1, tq]

    # ctx[c, n] = sum_m v[c, m] * e[n, m]  -- context produced directly in [C, tq] layout.
    ctx = lax.dot_general(
        v, e,
        dimension_numbers=(((1,), (1,)), ((), ())),
        preferred_element_type=jnp.float32)                                    # [C, tq] f32

    # Deferred normalization on the small [C, tq] tile (EUP approx reciprocal).
    o_ref[...] = (ctx * pl.reciprocal(l_row, approx=True)).astype(o_ref.dtype)


def cost_attention(query, keys, values, w, bias):
    """query/keys/values: [B, C, H, W]; w: [C, C]; bias: [C] -> context [B, C, H, W]."""
    B, C, H, W = query.shape
    N = H * W
    scale = float(C) ** (-0.5)

    q_flat = query.reshape(B, C, N)
    k_flat = keys.reshape(B, C, N)
    v_flat = values.reshape(B, C, N)
    b2d = bias.reshape(C, 1)

    # ---- query-tile width selection -------------------------------------------------------
    # Prefer tq = N (one query tile per batch element -> fewest grid steps, widest unmasked
    # output stores).  Fall back to 128-wide tiles when (a) the per-step VMEM footprint would
    # approach the scoped limit (budgeted against v7x, the smallest at 32 MiB default scoped),
    # or (b) B == 1, so a >=2-wide parallel grid axis keeps both v7x TensorCores busy.
    def _vmem_estimate(tq_):
        f32 = 4
        dbuf_in = 2 * (C * tq_ + 2 * C * N + C * C + C) * f32   # double-buffered input blocks
        dbuf_out = 2 * C * tq_ * f32                            # double-buffered output block
        temps = 3 * tq_ * N * f32                               # attn / e / misc f32 slabs
        return dbuf_in + dbuf_out + temps

    VMEM_BUDGET = 24 * 1024 * 1024

    if N % 128 == 0 and (B == 1 or _vmem_estimate(N) > VMEM_BUDGET):
        tq = 128
    else:
        tq = N
        # TODO(synk): key-tiled online-softmax path for large N that is not a multiple of 128
        #             (query axis cannot be tiled cleanly and the [N, N] slab may exceed VMEM).

    n_q_tiles = N // tq

    kernel = functools.partial(_cost_attention_kernel, scale=scale)

    q_spec = pl.BlockSpec((pl.Squeezed(), C, tq), lambda b, qi: (b, 0, qi))
    kv_spec = pl.BlockSpec((pl.Squeezed(), C, N), lambda b, qi: (b, 0, 0))
    o_spec = pl.BlockSpec((pl.Squeezed(), C, tq), lambda b, qi: (b, 0, qi))

    out = pl.pallas_call(
        kernel,
        out_shape=jax.ShapeDtypeStruct((B, C, N), query.dtype),
        grid_spec=pltpu.PrefetchScalarGridSpec(
            num_scalar_prefetch=0,
            grid=(B, n_q_tiles),
            in_specs=[
                q_spec,                                           # query tile  [C, tq]
                kv_spec,                                          # keys        [C, N]
                kv_spec,                                          # values      [C, N]
                pl.BlockSpec((C, C), lambda b, qi: (0, 0)),       # conv weight (shared)
                pl.BlockSpec((C, 1), lambda b, qi: (0, 0)),       # conv bias   (shared)
            ],
            out_specs=o_spec,                                     # context     [C, tq]
        ),
        compiler_params=pltpu.CompilerParams(
            # Both axes are fully independent (no cross-step accumulation); on v7x this lets
            # the two TensorCores split the batch (or the query tiles when B == 1).
            dimension_semantics=("parallel", "parallel")),
    )(q_flat, k_flat, v_flat, w, b2d)

    return out.reshape(B, C, H, W)


def _reference(query, keys, values, w, bias):
    B, C, H, W = query.shape
    N = H * W
    scale = float(C) ** (-0.5)
    qp = jnp.einsum("oc,bchw->bohw", w, query) + bias[None, :, None, None]
    qp = qp.reshape(B, C, N).transpose(0, 2, 1)          # [B, N, C]
    kf = keys.reshape(B, C, N)                           # [B, C, N]
    attn = jnp.einsum("bnc,bcm->bnm", qp, kf) * scale
    attn = jax.nn.softmax(attn, axis=-1)
    vf = values.reshape(B, C, N).transpose(0, 2, 1)      # [B, N, C]
    ctx = jnp.einsum("bnm,bmc->bnc", attn, vf)
    return ctx.transpose(0, 2, 1).reshape(B, C, H, W)


if __name__ == "__main__":
    B, C, H, W = 2, 32, 16, 16   # hidden_dim = 32, spatial 16x16 -> N = 256

    key = jax.random.PRNGKey(0)
    kq, kk, kv, kw, kb = jax.random.split(key, 5)

    query = jax.random.normal(kq, (B, C, H, W), dtype=jnp.float32)
    keys = jax.random.normal(kk, (B, C, H, W), dtype=jnp.float32)
    values = jax.random.normal(kv, (B, C, H, W), dtype=jnp.float32)

    # Deterministic 1x1-conv parameters (Conv2d(C, C, kernel_size=1) -> weight [C, C], bias [C])
    fan_in = C
    bound = 1.0 / (fan_in ** 0.5)
    w = jax.random.uniform(kw, (C, C), dtype=jnp.float32, minval=-bound, maxval=bound)
    bias = jax.random.uniform(kb, (C,), dtype=jnp.float32, minval=-bound, maxval=bound)

    out = cost_attention(query, keys, values, w, bias)
    out = jax.block_until_ready(out)

    ref = jax.block_until_ready(_reference(query, keys, values, w, bias))
    # f32 MXU operands throughout; remaining slack covers the EUP approx reciprocal.
    assert jnp.max(jnp.abs(out - ref)) < 1e-2, "mismatch vs reference"

    print("KERNEL_OK")
</pallas_src>

<mosaic_0001>
module attributes {stable_mosaic.version = 11 : i64} {
  func.func @_cost_attention_kernel(%arg0: i32, %arg1: i32, %arg2: memref<1x32x256xf32, #tpu.memory_space<vmem>>, %arg3: memref<1x32x256xf32, #tpu.memory_space<vmem>>, %arg4: memref<1x32x256xf32, #tpu.memory_space<vmem>>, %arg5: memref<32x32xf32, #tpu.memory_space<vmem>>, %arg6: memref<32x1xf32, #tpu.memory_space<vmem>>, %arg7: memref<1x32x256xf32, #tpu.memory_space<vmem>>) attributes {dimension_semantics = [#tpu.dimension_semantics<parallel>, #tpu.dimension_semantics<parallel>], iteration_bounds = array<i64: 2, 1>, scalar_prefetch = 0 : i64, scratch_operands = 0 : i64, tpu.core_type = #tpu.core_type<tc>, window_params = [{transform_indices = @transform_0, window_bounds = array<i64: 1, 32, 256>}, {transform_indices = @transform_1, window_bounds = array<i64: 1, 32, 256>}, {transform_indices = @transform_2, window_bounds = array<i64: 1, 32, 256>}, {pipeline_mode = #tpu.pipeline_mode<synchronous>, transform_indices = @transform_3, window_bounds = array<i64: 32, 32>}, {pipeline_mode = #tpu.pipeline_mode<synchronous>, transform_indices = @transform_4, window_bounds = array<i64: 32, 1>}, {transform_indices = @transform_5, window_bounds = array<i64: 1, 32, 256>}]} {
    %c0 = arith.constant 0 : index
    %c0_0 = arith.constant 0 : index
    %c0_1 = arith.constant 0 : index
    %0 = vector.load %arg2[%c0, %c0_0, %c0_1] : memref<1x32x256xf32, #tpu.memory_space<vmem>>, vector<1x32x256xf32>
    %1 = vector.shape_cast %0 : vector<1x32x256xf32> to vector<32x256xf32>
    %c0_2 = arith.constant 0 : index
    %c0_3 = arith.constant 0 : index
    %c0_4 = arith.constant 0 : index
    %2 = vector.load %arg3[%c0_2, %c0_3, %c0_4] : memref<1x32x256xf32, #tpu.memory_space<vmem>>, vector<1x32x256xf32>
    %3 = vector.shape_cast %2 : vector<1x32x256xf32> to vector<32x256xf32>
    %c0_5 = arith.constant 0 : index
    %c0_6 = arith.constant 0 : index
    %c0_7 = arith.constant 0 : index
    %4 = vector.load %arg4[%c0_5, %c0_6, %c0_7] : memref<1x32x256xf32, #tpu.memory_space<vmem>>, vector<1x32x256xf32>
    %5 = vector.shape_cast %4 : vector<1x32x256xf32> to vector<32x256xf32>
    %c0_8 = arith.constant 0 : index
    %c0_9 = arith.constant 0 : index
    %6 = vector.load %arg5[%c0_8, %c0_9] : memref<32x32xf32, #tpu.memory_space<vmem>>, vector<32x32xf32>
    %c0_10 = arith.constant 0 : index
    %c0_11 = arith.constant 0 : index
    %7 = vector.load %arg6[%c0_10, %c0_11] : memref<32x1xf32, #tpu.memory_space<vmem>>, vector<32x1xf32>
    %cst = arith.constant dense<0.000000e+00> : vector<32x256xf32>
    %8 = tpu.matmul %6, %1, %cst {dimension_numbers = #tpu.dot_dimension_numbers<[1], [0], [0], [1], [0, 0, 1, 1], [], []>} : vector<32x32xf32>, vector<32x256xf32>, vector<32x256xf32> -> vector<32x256xf32>
    %9 = vector.broadcast %7 : vector<32x1xf32> to vector<32x256xf32>
    %10 = arith.addf %8, %9 : vector<32x256xf32>
    %cst_12 = arith.constant 0.176776692 : f32
    %11 = vector.broadcast %cst_12 : f32 to vector<32x256xf32>
    %12 = arith.mulf %10, %11 : vector<32x256xf32>
    %cst_13 = arith.constant dense<0.000000e+00> : vector<256x256xf32>
    %13 = tpu.matmul %12, %3, %cst_13 {dimension_numbers = #tpu.dot_dimension_numbers<[0], [0], [1], [1], [0, 1, 1, 1], [], []>} : vector<32x256xf32>, vector<32x256xf32>, vector<256x256xf32> -> vector<256x256xf32>
    %cst_14 = arith.constant dense<0xFF800000> : vector<256xf32>
    %14 = vector.multi_reduction <maximumf>, %13, %cst_14 [1] : vector<256x256xf32> to vector<256xf32>
    %15 = vector.shape_cast %14 : vector<256xf32> to vector<256x1xf32>
    %16 = vector.broadcast %15 : vector<256x1xf32> to vector<256x256xf32>
    %17 = arith.subf %13, %16 : vector<256x256xf32>
    %18 = math.exp %17 : vector<256x256xf32>
    %cst_15 = arith.constant 1.000000e+00 : f32
    %19 = vector.broadcast %cst_15 : f32 to vector<1x256xf32>
    %cst_16 = arith.constant dense<0.000000e+00> : vector<1x256xf32>
    %20 = tpu.matmul %19, %18, %cst_16 {dimension_numbers = #tpu.dot_dimension_numbers<[1], [1], [0], [0], [0, 0, 1, 0], [], []>} : vector<1x256xf32>, vector<256x256xf32>, vector<1x256xf32> -> vector<1x256xf32>
    %cst_17 = arith.constant dense<0.000000e+00> : vector<32x256xf32>
    %21 = tpu.matmul %5, %18, %cst_17 {dimension_numbers = #tpu.dot_dimension_numbers<[1], [1], [0], [0], [0, 0, 1, 0], [], []>} : vector<32x256xf32>, vector<256x256xf32>, vector<32x256xf32> -> vector<32x256xf32>
    %22 = tpu.reciprocal %20 {approx = true} : vector<1x256xf32> -> vector<1x256xf32>
    %23 = vector.broadcast %22 : vector<1x256xf32> to vector<32x256xf32>
    %24 = arith.mulf %21, %23 : vector<32x256xf32>
    %c0_18 = arith.constant 0 : index
    %c0_19 = arith.constant 0 : index
    %c0_20 = arith.constant 0 : index
    %25 = vector.load %arg7[%c0_18, %c0_19, %c0_20] : memref<1x32x256xf32, #tpu.memory_space<vmem>>, vector<1x32x256xf32>
    %26 = vector.shape_cast %25 : vector<1x32x256xf32> to vector<32x256xf32>
    %27 = vector.shape_cast %24 : vector<32x256xf32> to vector<1x32x256xf32>
    tpu.vector_store %arg7[%c0_18, %c0_19, %c0_20], %27 {strides = array<i32>} : memref<1x32x256xf32, #tpu.memory_space<vmem>>, vector<1x32x256xf32>,
    return
  }
  func.func @transform_0(%arg0: i32, %arg1: i32) -> (i32, i32, i32) {
    %c0_i32 = arith.constant 0 : i32
    %c0_i32_0 = arith.constant 0 : i32
    return %arg0, %c0_i32, %arg1 : i32, i32, i32
  }
  func.func @transform_1(%arg0: i32, %arg1: i32) -> (i32, i32, i32) {
    %c0_i32 = arith.constant 0 : i32
    %c0_i32_0 = arith.constant 0 : i32
    %c0_i32_1 = arith.constant 0 : i32
    return %arg0, %c0_i32, %c0_i32_0 : i32, i32, i32
  }
  func.func @transform_2(%arg0: i32, %arg1: i32) -> (i32, i32, i32) {
    %c0_i32 = arith.constant 0 : i32
    %c0_i32_0 = arith.constant 0 : i32
    %c0_i32_1 = arith.constant 0 : i32
    return %arg0, %c0_i32, %c0_i32_0 : i32, i32, i32
  }
  func.func @transform_3(%arg0: i32, %arg1: i32) -> (i32, i32) {
    %c0_i32 = arith.constant 0 : i32
    %c0_i32_0 = arith.constant 0 : i32
    %c0_i32_1 = arith.constant 0 : i32
    return %c0_i32, %c0_i32_0 : i32, i32
  }
  func.func @transform_4(%arg0: i32, %arg1: i32) -> (i32, i32) {
    %c0_i32 = arith.constant 0 : i32
    %c0_i32_0 = arith.constant 0 : i32
    %c0_i32_1 = arith.constant 0 : i32
    return %c0_i32, %c0_i32_0 : i32, i32
  }
  func.func @transform_5(%arg0: i32, %arg1: i32) -> (i32, i32, i32) {
    %c0_i32 = arith.constant 0 : i32
    %c0_i32_0 = arith.constant 0 : i32
    return %arg0, %c0_i32, %arg1 : i32, i32, i32
  }
}

</mosaic_0001>

<bundles_post_ra>
// kernel: tpu_custom_call.1
= control target key start
LH: loop header
LB: loop body
LE: loop exit
PB: predicated region body
PF: predicated region fallthrough
CT: control target
= control target key end

     0   :  { %s2836_s0 = inlined_call_operand.hbm [shape: f32[2,32,256], index: 0, kind: input, shape index: {}]   ;;  %s2837_s1 = inlined_call_operand.hbm [shape: f32[2,32,256], index: 1, kind: input, shape index: {}]   ;;  %s2838_s2 = inlined_call_operand.hbm [shape: f32[2,32,256], index: 2, kind: input, shape index: {}]   ;;  %s2839_s3 = inlined_call_operand.vmem [shape: f32[32,32], index: 3, kind: input, shape index: {}]   ;;  %s2840_s4 = inlined_call_operand.vmem [shape: f32[32,1], index: 4, kind: input, shape index: {}]   ;;  %s2841_s5 = inlined_call_operand.hbm [shape: f32[2,32,256], index: 5, kind: output, shape index: {}]  }
   0x1   :  { %2867 = sst [smem:[#allocation30_spill]] %s2837_s1 }
   0x2   :  { %10 = vsyncpa [#allocation3], 0 }
   0x3   :  { %12 = vsyncpa [#allocation3 + $0x1], 0 }
   0x4   :  { %13 = vsyncpa [#allocation6], 0 }
   0x5   :  { %15 = vsyncpa [#allocation6 + $0x1], 0 }
   0x6   :  { %16 = vsyncpa [#allocation4], 0 }
   0x7   :  { %18 = vsyncpa [#allocation4 + $0x1], 0  ;;  %s2178_s18 = smov 0   ;;  %s2180_s19 = smov 0  }
   0x8   :  { %s2182_s20 = smov 0   ;;  %s2184_s21 = smov 0  }
   0x9   :  { %s2186_s22 = smov 0   ;;  %s2188_s23 = smov 0  }
   0xa LB: > { %2868 = sst [smem:[#allocation12_spill]] %s2131_s22  ;;  %s2209_s24 = sadd.s32 4294967295, %s2135_s23   ;;  %s2135_s23 = sphi %s2188_s23, %s24_s23   ;;  %s2131_s22 = sphi %s2186_s22, %s2921_s22   ;;  %s2127_s21 = sphi %s2184_s21, %s2920_s21   ;;  %s2123_s20 = sphi %s2182_s20, %s2924_s20   ;;  %s2119_s19 = sphi %s2180_s19, %s2923_s19   ;;  %s2115_s18 = sphi %s2178_s18, %s2922_s18  }
   0xb   : > { %2869 = sst [smem:[#allocation13_spill]] %s2135_s23  ;;  %s1540_s25 = sadd.s32 4294967294, %s2135_s23  }
   0xc   : > { %s36_s26 = sadd.s32 1, %s2131_s22  ;;  %s45_s27 = sadd.s32 1, %s2123_s20 }
   0xd   : > { %p38_p0 = scmp.ge.s32.totalorder %s36_s26, 2  ;;  %p52_p1 = scmp.ne.s32.totalorder %s2123_s20, %s2119_s19 }
   0xe   : > { %p53_p2 = scmp.eq.s32.totalorder %s2135_s23, 0  ;;  %p58_p3 = scmp.ne.s32.totalorder %s2119_s19, %s2115_s18 }
   0xf   : > { %s2926_s26 = smov (%p38_p0, %s36_s26), 0  ;;  %p59_p5 = scmp.eq.s32.totalorder %s2209_s24, 0 }
  0x10   : > { %2870 = sst [smem:[#allocation14_spill]] %s2926_s26  ;;  %p2221_p4 = por %p53_p2, %p52_p1 }
  0x11   : > { %s40_s29 = ssub.s32 %s2131_s22, %s2926_s26  ;;  %p178_p6 = scmp.eq.s32.totalorder %s2209_s24, 1 }
  0x12   : > { %p43_p7 = scmp.eq.s32.totalorder %s40_s29, 0  ;;  %p2229_p8 = por %p59_p5, %p58_p3 }
  0x13   : > { %p2233_p9 = por %p178_p6, %p52_p1  ;;  %p184_p10 = scmp.eq.s32.totalorder %s1540_s25, 1 }
  0x14   : > { %s2872_s30 = scalar_select %p2229_p8, 1, 0 }
  0x15   : > { %s2873_s6 = scalar_select %p2233_p9, 1, 0 }
  0x16   : > { %s2238_s7 = scalar_select %p43_p7, %s2123_s20, %s45_s27  }
  0x17   : > { %p2240_p11 = por %p184_p10, %p58_p3  ;;  %p1768_p13 = scmp.lt.s32.totalorder %s2135_s23, 2 }
  0x18   : > { %2874 = sst [smem:[#allocation15_spill]] %s2238_s7  ;;  %s2842_s9 = sand.u32 1, %s2123_s20  }
  0x19   : > { %s2875_s8 = scalar_select %p2240_p11, 1, 0 }
  0x1a   : > { %s2249_s10 = sshll.u32 %s2842_s9, 6  ;;  %s2252_s11 = sshll.u32 %s2131_s22, 10 }
  0x1b   : > { %2876 = sst [smem:[#allocation16_spill]] %s2875_s8  ;;  %p2256_p0 = pnand %p1768_p13, %p2221_p4 }
  0x1c   : > { %s233_s13 = sand.u32 1, %s2135_s23   ;;  %s2878_s1 = sld [smem:[#allocation30_spill]] }
  0x1d   : > { %s237_s17 = scalar_lea.vmem [#allocation5], %s2249_s10  ;;  %s2272_s27 = scalar_lea.sflag [#allocation6], %s233_s13 }
  0x1e   : > { %s244_s25 = sshll.u32 %s237_s17, 4  ;;  %p2278_p4 = pneg %p2256_p0  ;;  %s2269_s25 = int_to_ptr.vmem [resolvable:$true] %s244_s25 }
  0x22   : > { %s2265_s16 = scalar_lea.hbm %s2878_s1, %s2252_s11  ;;  %s1964_s17 = scalar_lea.hbm %s2878_s1, 2048 }
  0x23   : > { %s1959_s28 = scalar_lea.hbm %s2265_s16, 1024  ;;  %p1965_p7 = scmp.lt.u32.totalorder %s2265_s16, %s2878_s1 }
  0x24   : > { %p1960_p3 = scmp.ne.s32.totalorder %s2265_s16, %s1959_s28  ;;  %p1966_p10 = scmp.lt.u32.totalorder %s1964_s17, %s1959_s28 }
  0x25   : > { %p1968_p12 = scmp.lt.u32.totalorder %s1959_s28, %s2265_s16 }
  0x26   : > { %p1962_p5 = pnand %p2278_p4, %p1960_p3  ;;  %p1967_p13 = por %p1966_p10, %p1965_p7 }
  0x28   : > { %p1963_p6 = pneg %p1962_p5  ;;  %p1969_p1 = por %p1968_p12, %p1967_p13 }
  0x2a   : > { %p1970_p2 = pnand %p1969_p1, %p1963_p6 }
  0x2c   : > { %1973 = shalt.err (!%p1970_p2)
}
  0x2d   : > { %s1974_s13 = scalar_lea.vmem %s2269_s25, 1024  ;;  %s2137_s14 = smov [#allocation5]  }
  0x2e   : > { %p1975_p3 = scmp.ne.s32.totalorder %s2269_s25, %s1974_s13  ;;  %s1979_s15 = sshll.u32 %s2137_s14, 4  ;;  %s1980_s15 = int_to_ptr.vmem [resolvable:$false] %s1979_s15 }
  0x2f   : > { %s1981_s26 = scalar_lea.vmem %s1980_s15, 2048  ;;  %p1982_p9 = scmp.lt.s32.totalorder %s2269_s25, %s1980_s15 }
  0x30   : > { %p1977_p5 = pnand %p1975_p3, %p2278_p4  ;;  %p1983_p8 = scmp.lt.s32.totalorder %s1981_s26, %s1974_s13 }
  0x32   : > { %p1978_p11 = pneg %p1977_p5  ;;  %p1984_p7 = por %p1983_p8, %p1982_p9 }
  0x34   : > { %p1985_p10 = pnand %p1984_p7, %p1978_p11 }
  0x36   : > { %1988 = shalt.err (!%p1985_p10)
}
  0x37   : > { %s2846_s9 = smov 256   ;;  %s2848_s28 = smov 16  }
  0x38   : > { %1760 = dma.hbm_to_vmem [thread:$0]  (!%p2256_p0), %s2265_s16, 1024, %s2269_s25, %s2272_s27, %s2846_s9, %s2846_s9, %s2848_s28  }
  0x39   : > { %p2880_p8 = scmp.lt.s32.totalorder %s2135_s23, 3  ;;  %p2881_p9 = scmp.ge.s32.totalorder %s2135_s23, 1 }
  0x3a   : > { %s2317_s15 = scalar_lea.hbm %s2836_s0, %s2252_s11  ;;  %s214_s26 = scalar_lea.vmem [#allocation2], %s2249_s10 }
  0x3b   : > { %p2309_p11 = pnand %p2881_p9, %p2880_p8  ;;  %s223_s1 = sshll.u32 %s214_s26, 4  ;;  %s2320_s1 = int_to_ptr.vmem [resolvable:$true] %s223_s1 }
  0x3c   : > { %s2326_s9 = scalar_lea.hbm %s2838_s2, %s2252_s11  ;;  %s2883_s28 = sand.u32 1, %s2123_s20  }
  0x3d   : > { %s2882_s17 = scalar_select %p2309_p11, 1, 0 }
  0x3e   : > { %s2330_s22 = scalar_lea.sflag [#allocation3], %s2883_s28  ;;  %s1989_s7 = scalar_lea.hbm %s2317_s15, 1024 }
  0x3f   : > { %p1990_p12 = scmp.ne.s32.totalorder %s2317_s15, %s1989_s7  ;;  %s1994_s23 = scalar_lea.hbm %s2836_s0, 2048 }
  0x40   : > { %p1995_p6 = scmp.lt.u32.totalorder %s2317_s15, %s2836_s0  ;;  %p1996_p13 = scmp.lt.u32.totalorder %s1994_s23, %s1989_s7 }
  0x41   : > { %p1992_p1 = pnand %p1990_p12, %p2278_p4  ;;  %p1998_p5 = scmp.lt.u32.totalorder %s1989_s7, %s2317_s15 }
  0x42   : > { %p1997_p3 = por %p1996_p13, %p1995_p6 }
  0x43   : > { %p1993_p2 = pneg %p1992_p1 }
  0x44   : > { %p1999_p7 = por %p1998_p5, %p1997_p3 }
  0x46   : > { %p2000_p10 = pnand %p1999_p7, %p1993_p2 }
  0x48   : > { %2003 = shalt.err (!%p2000_p10)
}
  0x49   : > { %s2004_s11 = scalar_lea.vmem %s2320_s1, 1024  ;;  %s2140_s28 = smov [#allocation2]  }
  0x4a   : > { %p2005_p8 = scmp.ne.s32.totalorder %s2320_s1, %s2004_s11  ;;  %s2009_s16 = sshll.u32 %s2140_s28, 4  ;;  %s2010_s16 = int_to_ptr.vmem [resolvable:$false] %s2009_s16 }
  0x4b   : > { %s2011_s8 = scalar_lea.vmem %s2010_s16, 2048  ;;  %p2012_p1 = scmp.lt.s32.totalorder %s2320_s1, %s2010_s16 }
  0x4c   : > { %p2007_p9 = pnand %p2005_p8, %p2278_p4  ;;  %p2013_p11 = scmp.lt.s32.totalorder %s2011_s8, %s2004_s11 }
  0x4e   : > { %p2008_p12 = pneg %p2007_p9  ;;  %p2014_p6 = por %p2013_p11, %p2012_p1 }
  0x50   : > { %p2015_p13 = pnand %p2014_p6, %p2008_p12 }
  0x52   : > { %2018 = shalt.err (!%p2015_p13)
}
  0x53   : > { %s2884_s23 = smov 16   ;;  %s2885_s7 = smov 256  }
  0x54   : > { %1757 = dma.hbm_to_vmem [thread:$0]  (!%p2256_p0), %s2317_s15, 1024, %s2320_s1, %s2330_s22, %s2885_s7, %s2885_s7, %s2884_s23  }
  0x55   : > { %s258_s25 = scalar_lea.vmem [#allocation7], %s2249_s10  ;;  %s2019_s14 = scalar_lea.hbm %s2326_s9, 1024 }
  0x56   : > { %s265_s13 = sshll.u32 %s258_s25, 4  ;;  %p2020_p11 = scmp.ne.s32.totalorder %s2326_s9, %s2019_s14  ;;  %s2358_s13 = int_to_ptr.vmem [resolvable:$true] %s265_s13 }
  0x57   : > { %s2024_s28 = scalar_lea.hbm %s2838_s2, 2048  ;;  %p2025_p5 = scmp.lt.u32.totalorder %s2326_s9, %s2838_s2 }
  0x58   : > { %p2022_p2 = pnand %p2020_p11, %p2278_p4  ;;  %p2026_p7 = scmp.lt.u32.totalorder %s2024_s28, %s2019_s14 }
  0x59   : > { %p2028_p8 = scmp.lt.u32.totalorder %s2019_s14, %s2326_s9 }
  0x5a   : > { %p2023_p3 = pneg %p2022_p2  ;;  %p2027_p10 = por %p2026_p7, %p2025_p5 }
  0x5c   : > { %p2029_p9 = por %p2028_p8, %p2027_p10 }
  0x5e   : > { %p2030_p12 = pnand %p2029_p9, %p2023_p3 }
  0x60   : > { %2033 = shalt.err (!%p2030_p12)
}
  0x61   : > { %s2034_s1 = scalar_lea.vmem %s2358_s13, 1024  ;;  %s2141_s22 = smov [#allocation7]  }
  0x62   : > { %p2035_p1 = scmp.ne.s32.totalorder %s2358_s13, %s2034_s1  ;;  %s2039_s10 = sshll.u32 %s2141_s22, 4  ;;  %s2040_s10 = int_to_ptr.vmem [resolvable:$false] %s2039_s10 }
  0x63   : > { %s2041_s15 = scalar_lea.vmem %s2040_s10, 2048  ;;  %p2042_p11 = scmp.lt.s32.totalorder %s2358_s13, %s2040_s10 }
  0x64   : > { %p2037_p6 = pnand %p2035_p1, %p2278_p4  ;;  %p2043_p2 = scmp.lt.s32.totalorder %s2041_s15, %s2034_s1 }
  0x66   : > { %p2038_p13 = pneg %p2037_p6  ;;  %p2044_p5 = por %p2043_p2, %p2042_p11 }
  0x68   : > { %p2045_p7 = pnand %p2044_p5, %p2038_p13 }
  0x6a   : > { %2048 = shalt.err (!%p2045_p7)
}
  0x6b   : > { %1763 = dma.hbm_to_vmem [thread:$0]  (!%p2256_p0), %s2326_s9, 1024, %s2358_s13, %s2272_s27, %s2885_s7, %s2885_s7, %s2884_s23  }
  0x6c   : > { %p2886_p4 = scmp.ne.s32.totalorder %s2882_s17, 0 }
  0x6e   : > { %277 = sbr.rel (%p2886_p4) target bundleno = 1232 (0x4d0), region = 40 }
  0x75   : > { %s2388_s29 = sand.u32 1, %s2119_s19   ;;  %p2887_p3 = scmp.ne.s32.totalorder %s2872_s30, 0 }
  0x76   : > { %s2391_s25 = sshll.u32 %s2388_s29, 6  ;;  %s280_s12 = scalar_lea.sflag [#allocation3], %s2388_s29 }
  0x77   : > { %s283_s14 = scalar_lea.vmem [#allocation2], %s2391_s25 }
  0x78   : > { %2102 = dma.done.wait (%p2887_p3), %s280_s12, 1024  }
  0x79   : > { %2104 = vsyncadd (%p2887_p3), %s280_s12, 4294966272  ;;  %s288_s27 = sand.u32 1, %s2209_s24   ;;  %s2401_s17 = scalar_lea.vmem [#allocation5], %s2391_s25 }
  0x7a   : > { %s289_s9 = scalar_lea.sflag [#allocation6], %s288_s27 }
  0x7b   : > { %2106 = dma.done.wait (%p2887_p3), %s289_s9, 2048  }
  0x7c   : > { %2108 = vsyncadd (%p2887_p3), %s289_s9, 4294965248  ;;  %v2142_v0 = vmov 0.0   ;;  %v2143_v1 = vmov 0   ;;  %v341_v2 = vld [vmem:[%s283_s14 + $0x8] sm:$0xff]  ;;  %v343_v3 = vld [vmem:[%s283_s14 + $0x18] sm:$0xff]  ;;  %vm392_vm0 = vcmask 261120  }
  0x7d   : > { %469 = vmatprep.mubr.f32.mxu0 %v2142_v0  ;;  %1825 = vset.pattern.permute.xlu0 %v2143_v1  ;;  %v340_v4 = vld [vmem:[%s283_s14] sm:$0xff]  ;;  %v1602_v5 = vpack.c.bf16 %v343_v3, %v341_v2  ;;  %v342_v6 = vld [vmem:[%s283_s14 + $0x10] sm:$0xff]  ;;  %v345_v7 = vld [vmem:[%s283_s14 + $0x28] sm:$0xff]  ;;  %s2715_s27 = scalar_lea.vmem [#allocation7], %s2391_s25  ;;  %s337_s9 = scalar_lea.vmem [#allocation8], %s2391_s25 }
  0x7e   : > { %1826 = vset.pattern.permute.xlu1 %v2143_v1  ;;  %726 = vmatprep.mubr.f32.mxu1 %v2142_v0  ;;  %v347_v8 = vld [vmem:[%s283_s14 + $0x38] sm:$0xff]  ;;  %v1604_v9 = vpack.c.bf16 %v342_v6, %v340_v4  ;;  %v344_v11 = vld [vmem:[%s283_s14 + $0x20] sm:$0xff]  ;;  %v346_v12 = vld [vmem:[%s283_s14 + $0x30] sm:$0xff]  ;;  %s1601_s24 = sshll.u32 %s2127_s21, 10  ;;  %s1394_s21 = scalar_lea.sflag [#allocation4], %s2388_s29 }
  0x7f   : > { %v1606_v10 = vpack.c.bf16 %v347_v8, %v345_v7  ;;  %1603 = vmatprep.subr.bf16.mxu0 %v1602_v5  ;;  %v1608_v13 = vpack.c.bf16 %v346_v12, %v344_v11  ;;  %v368_v14 = vld [vmem:[%s2840_s4] sm:$0xff]  ;;  %v370_v15 = vld [vmem:[%s2840_s4 + $0x10] sm:$0xff]  ;;  %v369_v16 = vld [vmem:[%s2840_s4 + $0x8] sm:$0xff]  ;;  %s2787_s25 = scalar_lea.hbm %s2841_s5, %s1601_s24  ;;  %p2914_p10 = scmp.ne.s32.totalorder %s2873_s6, 0 }
  0x80   : > { %1605 = vmatpush1.bf16.msra.mxu0 %v1604_v9  ;;  %374 = vperm.xlu0 %1825, %v368_v14   ;;  %v371_v17 = vld [vmem:[%s2840_s4 + $0x18] sm:$0xff]  ;;  %v364_v18 = vld [vmem:[%s2839_s3] sm:$0xff]  ;;  %v365_v19 = vld [vmem:[%s2839_s3 + $0x8] sm:$0xff]  ;;  %s2145_s13 = smov [#allocation8]  }
  0x81   : > { %1607 = vmatprep.subr.bf16.mxu0 %v1606_v10  ;;  %384 = vperm.xlu1 %1826, %v370_v15   ;;  %v366_v20 = vld [vmem:[%s2839_s3 + $0x10] sm:$0xff]  ;;  %v367_v21 = vld [vmem:[%s2839_s3 + $0x18] sm:$0xff]  ;;  %v349_v22 = vld [vmem:[%s2401_s17 + $0x8] sm:$0xff]  ;;  %s2053_s26 = sshll.u32 %s2145_s13, 4  ;;  %s2054_s26 = int_to_ptr.vmem [resolvable:$false] %s2053_s26 }
  0x82   : > { %v351_v23 = vld [vmem:[%s2401_s17 + $0x18] sm:$0xff]  ;;  %v348_v24 = vld [vmem:[%s2401_s17] sm:$0xff]  ;;  %v350_v26 = vld [vmem:[%s2401_s17 + $0x10] sm:$0xff]  ;;  %s2055_s11 = scalar_lea.vmem %s2054_s26, 2048 }
  0x83   : > { %v1610_v25 = vpack.c.bf16 %v351_v23, %v349_v22  ;;  %v353_v27 = vld [vmem:[%s2401_s17 + $0x28] sm:$0xff]  ;;  %v355_v28 = vld [vmem:[%s2401_s17 + $0x38] sm:$0xff]  ;;  %v1612_v29 = vpack.c.bf16 %v350_v26, %v348_v24  ;;  %v352_v31 = vld [vmem:[%s2401_s17 + $0x20] sm:$0xff] }
  0x84   : > { %1609 = vmatpush1.bf16.msra.mxu0 %v1608_v13  ;;  %379 = vperm.xlu0 %1825, %v369_v16   ;;  %v1614_v30 = vpack.c.bf16 %v355_v28, %v353_v27  ;;  %v354_v32 = vld [vmem:[%s2401_s17 + $0x30] sm:$0xff]  ;;  %s1409_s17 = sshll.u32 %s337_s9, 4  ;;  %s2782_s17 = int_to_ptr.vmem [resolvable:$true] %s1409_s17 }
  0x85   : > { %389 = vperm.xlu1 %1826, %v371_v17   ;;  %1611 = vmatprep.subr.bf16.mxu1 %v1610_v25  ;;  %v1616_v33 = vpack.c.bf16 %v354_v32, %v352_v31  ;;  %s2049_s7 = scalar_lea.vmem %s2782_s17, 1024  ;;  %p2056_p12 = scmp.lt.s32.totalorder %s2782_s17, %s2054_s26 }
  0x86   : > { %1613 = vmatpush1.bf16.msra.mxu1 %v1612_v29  ;;  %p2050_p0 = scmp.ne.s32.totalorder %s2782_s17, %s2049_s7  ;;  %p2057_p1 = scmp.lt.s32.totalorder %s2055_s11, %s2049_s7 }
  0x87   : > { %1557 = vmatmul.mubr.msk.f32.vlgmr.msra.gmra.mrb[0].mxu0 %vm392_vm0, %v364_v18  ;;  %1615 = vmatprep.subr.bf16.mxu1 %v1614_v30 }
  0x88   : > { %475 = vmatprep.mubr.f32.mxu0 %v2142_v0  ;;  %p2051_p8 = pnand %p2050_p0, %p2914_p10  ;;  %p2058_p6 = por %p2057_p1, %p2056_p12 }
  0x8a   : > { %1617 = vmatpush1.bf16.msra.mxu1 %v1616_v33  ;;  %p2052_p9 = pneg %p2051_p8 }
  0x8b   : > { %1558 = vmatmul.mubr.msk.f32.gmra.mrb[2].mxu0 %vm392_vm0, %v365_v19 }
  0x8c   : > { %481 = vmatprep.mubr.f32.mxu0 %v2142_v0  ;;  %p2059_p13 = pnand %p2058_p6, %p2052_p9 }
  0x8f   : > { %1559 = vmatmul.mubr.msk.f32.gmra.mrb[4].mxu0 %vm392_vm0, %v366_v20 }
  0x90   : > { %487 = vmatprep.mubr.f32.mxu0 %v2142_v0 }
  0x93   : > { %1560 = vmatmul.mubr.msk.f32.gmra.mrb[6].mxu0 %vm392_vm0, %v367_v21 }
  0xff   : > { %v375_v34 = vpop.permute.xlu0 %374 }
 0x100   : > { %v385_v45 = vpop.permute.xlu1 %384 }
 0x103   : > { %v380_v40 = vpop.permute.xlu0 %379 }
 0x104   : > { %v390_v54 = vpop.permute.xlu1 %389 }
 0x15a   : > { %v471_v35 = vpop.f32.mrb[0].mxu0 }
 0x15b   : > { %v472_v36 = vadd.f32 %v471_v35, %v375_v34  ;;  %v473_v37 = vpop.f32.mrb[1].mxu0 }
 0x15c   : > { %v474_v38 = vadd.f32 %v473_v37, %v375_v34 }
 0x15d   : > { %v494_v39 = vmul.f32 0.17677669, %v472_v36 }
 0x15e   : > { %v495_v41 = vmul.f32 0.17677669, %v474_v38  ;;  %v477_v42 = vpop.f32.mrb[2].mxu0 }
 0x15f   : > { %v478_v43 = vadd.f32 %v477_v42, %v380_v40  ;;  %v479_v44 = vpop.f32.mrb[3].mxu0  ;;  %502 = vxpose.xlu0.b32.start [1/4] (short) %v494_v39, 128 }
 0x160   : > { %v480_v46 = vadd.f32 %v479_v44, %v380_v40  ;;  %534 = vxpose.xlu1.b32.start [1/4] (short) %v495_v41, 128 }
 0x161   : > { %v496_v47 = vmul.f32 0.17677669, %v478_v43 }
 0x162   : > { %v497_v48 = vmul.f32 0.17677669, %v480_v46  ;;  %v483_v49 = vpop.f32.mrb[4].mxu0 }
 0x163   : > { %v484_v50 = vadd.f32 %v483_v49, %v385_v45  ;;  %v485_v51 = vpop.f32.mrb[5].mxu0  ;;  %503 = vxpose.xlu0.b32.cont [2/4] (short) %v496_v47, 128 }
 0x164   : > { %v486_v52 = vadd.f32 %v485_v51, %v385_v45  ;;  %535 = vxpose.xlu1.b32.cont [2/4] (short) %v497_v48, 128 }
 0x165   : > { %v498_v53 = vmul.f32 0.17677669, %v484_v50 }
 0x166   : > { %v499_v55 = vmul.f32 0.17677669, %v486_v52  ;;  %v489_v56 = vpop.f32.mrb[6].mxu0 }
 0x167   : > { %v490_v57 = vadd.f32 %v489_v56, %v390_v54  ;;  %v491_v58 = vpop.f32.mrb[7].mxu0  ;;  %504 = vxpose.xlu0.b32.cont [3/4] (short) %v498_v53, 128 }
 0x168   : > { %v492_v59 = vadd.f32 %v491_v58, %v390_v54  ;;  %536 = vxpose.xlu1.b32.cont [3/4] (short) %v499_v55, 128 }
 0x169   : > { %v500_v60 = vmul.f32 0.17677669, %v490_v57 }
 0x16a   : > { %v501_v61 = vmul.f32 0.17677669, %v492_v59 }
 0x16b   : > { %505 = vxpose.xlu0.b32.end [4/4] (short) %v500_v60, 128 }
 0x16c   : > { %537 = vxpose.xlu1.b32.end [4/4] (short) %v501_v61, 128 }
 0x1df   : > { %v518_v62 = vpop.trf.xlu0 }
 0x1e0   : > { %1561 = vmatmul.mubr.msk.f32.vlgmr.msra.gmra.mrb[0].mxu1 %vm392_vm0, %v518_v62  ;;  %v550_v8 = vpop.trf.xlu1 }
 0x1e1   : > { %732 = vmatprep.mubr.f32.mxu1 %v2142_v0 }
 0x1e3   : > { %v519_v63 = vpop.trf.xlu0 }
 0x1e4   : > { %1562 = vmatmul.mubr.msk.f32.gmra.mrb[2].mxu1 %vm392_vm0, %v519_v63  ;;  %v551_v10 = vpop.trf.xlu1 }
 0x1e5   : > { %738 = vmatprep.mubr.f32.mxu1 %v2142_v0 }
 0x1e7   : > { %v520_v1 = vpop.trf.xlu0 }
 0x1e8   : > { %1563 = vmatmul.mubr.msk.f32.gmra.mrb[4].mxu1 %vm392_vm0, %v520_v1  ;;  %v552_v13 = vpop.trf.xlu1 }
 0x1e9   : > { %744 = vmatprep.mubr.f32.mxu1 %v2142_v0 }
 0x1eb   : > { %v521_v2 = vpop.trf.xlu0 }
 0x1ec   : > { %1564 = vmatmul.mubr.msk.f32.gmra.mrb[6].mxu1 %vm392_vm0, %v521_v2  ;;  %v553_v15 = vpop.trf.xlu1 }
 0x1ed   : > { %750 = vmatprep.mubr.f32.mxu1 %v2142_v0 }
 0x1ef   : > { %v522_v3 = vpop.trf.xlu0 }
 0x1f0   : > { %1565 = vmatmul.mubr.msk.f32.gmra.mrb[8].mxu1 %vm392_vm0, %v522_v3  ;;  %v554_v18 = vpop.trf.xlu1 }
 0x1f1   : > { %756 = vmatprep.mubr.f32.mxu1 %v2142_v0 }
 0x1f3   : > { %v523_v4 = vpop.trf.xlu0 }
 0x1f4   : > { %1566 = vmatmul.mubr.msk.f32.gmra.mrb[10].mxu1 %vm392_vm0, %v523_v4  ;;  %v555_v20 = vpop.trf.xlu1 }
 0x1f5   : > { %762 = vmatprep.mubr.f32.mxu1 %v2142_v0 }
 0x1f7   : > { %v524_v5 = vpop.trf.xlu0 }
 0x1f8   : > { %1567 = vmatmul.mubr.msk.f32.gmra.mrb[12].mxu1 %vm392_vm0, %v524_v5  ;;  %v556_v21 = vpop.trf.xlu1 }
 0x1f9   : > { %768 = vmatprep.mubr.f32.mxu1 %v2142_v0 }
 0x1fb   : > { %v525_v6 = vpop.trf.xlu0 }
 0x1fc   : > { %1568 = vmatmul.mubr.msk.f32.gmra.mrb[14].mxu1 %vm392_vm0, %v525_v6  ;;  %v557_v22 = vpop.trf.xlu1 }
 0x1fd   : > { %774 = vmatprep.mubr.f32.mxu1 %v2142_v0 }
 0x1ff   : > { %v526_v7 = vpop.trf.xlu0 }
 0x200   : > { %1569 = vmatmul.mubr.msk.f32.gmra.mrb[16].mxu1 %vm392_vm0, %v526_v7  ;;  %v558_v23 = vpop.trf.xlu1 }
 0x201   : > { %780 = vmatprep.mubr.f32.mxu1 %v2142_v0 }
 0x203   : > { %v527_v9 = vpop.trf.xlu0 }
 0x204   : > { %1570 = vmatmul.mubr.msk.f32.gmra.mrb[18].mxu1 %vm392_vm0, %v527_v9  ;;  %v559_v24 = vpop.trf.xlu1 }
 0x205   : > { %786 = vmatprep.mubr.f32.mxu1 %v2142_v0 }
 0x207   : > { %v528_v11 = vpop.trf.xlu0 }
 0x208   : > { %1571 = vmatmul.mubr.msk.f32.gmra.mrb[20].mxu1 %vm392_vm0, %v528_v11  ;;  %v560_v25 = vpop.trf.xlu1 }
 0x209   : > { %792 = vmatprep.mubr.f32.mxu1 %v2142_v0 }
 0x20b   : > { %v529_v12 = vpop.trf.xlu0 }
 0x20c   : > { %1572 = vmatmul.mubr.msk.f32.gmra.mrb[22].mxu1 %vm392_vm0, %v529_v12  ;;  %v561_v26 = vpop.trf.xlu1 }
 0x20d   : > { %798 = vmatprep.mubr.f32.mxu1 %v2142_v0 }
 0x20f   : > { %v530_v14 = vpop.trf.xlu0 }
 0x210   : > { %1573 = vmatmul.mubr.msk.f32.gmra.mrb[24].mxu1 %vm392_vm0, %v530_v14  ;;  %v562_v27 = vpop.trf.xlu1 }
 0x211   : > { %804 = vmatprep.mubr.f32.mxu1 %v2142_v0 }
 0x213   : > { %v531_v16 = vpop.trf.xlu0 }
 0x214   : > { %1574 = vmatmul.mubr.msk.f32.gmra.mrb[26].mxu1 %vm392_vm0, %v531_v16  ;;  %v563_v28 = vpop.trf.xlu1 }
 0x215   : > { %810 = vmatprep.mubr.f32.mxu1 %v2142_v0 }
 0x217   : > { %v532_v17 = vpop.trf.xlu0 }
 0x218   : > { %1575 = vmatmul.mubr.msk.f32.gmra.mrb[28].mxu1 %vm392_vm0, %v532_v17  ;;  %v564_v29 = vpop.trf.xlu1 }
 0x219   : > { %816 = vmatprep.mubr.f32.mxu1 %v2142_v0 }
 0x21b   : > { %v533_v19 = vpop.trf.xlu0 }
 0x21c   : > { %1576 = vmatmul.mubr.msk.f32.gmra.mrb[30].mxu1 %vm392_vm0, %v533_v19  ;;  %v565_v30 = vpop.trf.xlu1 }
 0x21d   : > { %822 = vmatprep.mubr.f32.mxu1 %v2142_v0 }
 0x220   : > { %1577 = vmatmul.mubr.msk.f32.gmra.mrb[32].mxu1 %vm392_vm0, %v550_v8 }
 0x221   : > { %828 = vmatprep.mubr.f32.mxu1 %v2142_v0 }
 0x224   : > { %1578 = vmatmul.mubr.msk.f32.gmra.mrb[34].mxu1 %vm392_vm0, %v551_v10 }
 0x225   : > { %834 = vmatprep.mubr.f32.mxu1 %v2142_v0 }
 0x228   : > { %1579 = vmatmul.mubr.msk.f32.gmra.mrb[36].mxu1 %vm392_vm0, %v552_v13 }
 0x229   : > { %840 = vmatprep.mubr.f32.mxu1 %v2142_v0 }
 0x22c   : > { %1580 = vmatmul.mubr.msk.f32.gmra.mrb[38].mxu1 %vm392_vm0, %v553_v15 }
 0x22d   : > { %846 = vmatprep.mubr.f32.mxu1 %v2142_v0 }
 0x230   : > { %1581 = vmatmul.mubr.msk.f32.gmra.mrb[40].mxu1 %vm392_vm0, %v554_v18 }
 0x231   : > { %852 = vmatprep.mubr.f32.mxu1 %v2142_v0 }
 0x234   : > { %1582 = vmatmul.mubr.msk.f32.gmra.mrb[42].mxu1 %vm392_vm0, %v555_v20 }
 0x235   : > { %858 = vmatprep.mubr.f32.mxu1 %v2142_v0 }
 0x238   : > { %1583 = vmatmul.mubr.msk.f32.gmra.mrb[44].mxu1 %vm392_vm0, %v556_v21 }
 0x239   : > { %864 = vmatprep.mubr.f32.mxu1 %v2142_v0 }
 0x23c   : > { %1584 = vmatmul.mubr.msk.f32.gmra.mrb[46].mxu1 %vm392_vm0, %v557_v22 }
 0x23d   : > { %870 = vmatprep.mubr.f32.mxu1 %v2142_v0 }
 0x240   : > { %1585 = vmatmul.mubr.msk.f32.gmra.mrb[48].mxu1 %vm392_vm0, %v558_v23 }
 0x241   : > { %876 = vmatprep.mubr.f32.mxu1 %v2142_v0 }
 0x244   : > { %1586 = vmatmul.mubr.msk.f32.gmra.mrb[50].mxu1 %vm392_vm0, %v559_v24 }
 0x245   : > { %882 = vmatprep.mubr.f32.mxu1 %v2142_v0 }
 0x248   : > { %1587 = vmatmul.mubr.msk.f32.gmra.mrb[52].mxu1 %vm392_vm0, %v560_v25 }
 0x249   : > { %888 = vmatprep.mubr.f32.mxu1 %v2142_v0 }
 0x24c   : > { %1588 = vmatmul.mubr.msk.f32.gmra.mrb[54].mxu1 %vm392_vm0, %v561_v26 }
 0x24d   : > { %894 = vmatprep.mubr.f32.mxu1 %v2142_v0 }
 0x250   : > { %1589 = vmatmul.mubr.msk.f32.gmra.mrb[56].mxu1 %vm392_vm0, %v562_v27 }
 0x251   : > { %900 = vmatprep.mubr.f32.mxu1 %v2142_v0 }
 0x254   : > { %1590 = vmatmul.mubr.msk.f32.gmra.mrb[58].mxu1 %vm392_vm0, %v563_v28 }
 0x255   : > { %906 = vmatprep.mubr.f32.mxu1 %v2142_v0 }
 0x258   : > { %1591 = vmatmul.mubr.msk.f32.gmra.mrb[60].mxu1 %vm392_vm0, %v564_v29 }
 0x259   : > { %912 = vmatprep.mubr.f32.mxu1 %v2142_v0 }
 0x25c   : > { %1592 = vmatmul.mubr.msk.f32.gmra.mrb[62].mxu1 %vm392_vm0, %v565_v30 }
 0x2b3   : > { %v2511_v31 = vpop.f32.mrb[0].mxu1 }
 0x2b4   : > { %v2513_v32 = vpop.f32.mrb[1].mxu1 }
 0x2b5   : > { %v919_v33 = vmax.f32 %v2511_v31, %v2513_v32 }
 0x2b7   : > { %920 = vmax.xlane.f32.xlu0 %v919_v33  ;;  %v2517_v34 = vpop.f32.mrb[2].mxu1 }
 0x2b8   : > { %v2519_v35 = vpop.f32.mrb[3].mxu1 }
 0x2b9   : > { %v922_v36 = vmax.f32 %v2517_v34, %v2519_v35 }
 0x2bb   : > { %923 = vmax.xlane.f32.xlu1 %v922_v36  ;;  %v2523_v37 = vpop.f32.mrb[4].mxu1 }
 0x2bc   : > { %v2525_v0 = vpop.f32.mrb[5].mxu1 }
 0x2bd   : > { %v925_v38 = vmax.f32 %v2523_v37, %v2525_v0 }
 0x2bf   : > { %926 = vmax.xlane.f32.xlu0 %v925_v38  ;;  %v2529_v39 = vpop.f32.mrb[6].mxu1 }
 0x2c0   : > { %v2531_v40 = vpop.f32.mrb[7].mxu1 }
 0x2c1   : > { %v928_v41 = vmax.f32 %v2529_v39, %v2531_v40 }
 0x2c3   : > { %929 = vmax.xlane.f32.xlu0 %v928_v41  ;;  %v2535_v42 = vpop.f32.mrb[8].mxu1 }
 0x2c4   : > { %v2537_v43 = vpop.f32.mrb[9].mxu1 }
 0x2c5   : > { %v931_v44 = vmax.f32 %v2535_v42, %v2537_v43 }
 0x2c7   : > { %932 = vmax.xlane.f32.xlu1 %v931_v44  ;;  %v2541_v45 = vpop.f32.mrb[10].mxu1 }
 0x2c8   : > { %v2543_v46 = vpop.f32.mrb[11].mxu1 }
 0x2c9   : > { %v934_v47 = vmax.f32 %v2541_v45, %v2543_v46 }
 0x2cb   : > { %935 = vmax.xlane.f32.xlu0 %v934_v47  ;;  %v2547_v48 = vpop.f32.mrb[12].mxu1 }
 0x2cc   : > { %v2549_v49 = vpop.f32.mrb[13].mxu1 }
 0x2cd   : > { %v937_v50 = vmax.f32 %v2547_v48, %v2549_v49 }
 0x2cf   : > { %938 = vmax.xlane.f32.xlu1 %v937_v50  ;;  %v2553_v51 = vpop.f32.mrb[14].mxu1 }
 0x2d0   : > { %v2555_v52 = vpop.f32.mrb[15].mxu1 }
 0x2d1   : > { %v940_v53 = vmax.f32 %v2553_v51, %v2555_v52 }
 0x2d3   : > { %941 = vmax.xlane.f32.xlu0 %v940_v53  ;;  %v2559_v54 = vpop.f32.mrb[16].mxu1 }
 0x2d4   : > { %v2561_v55 = vpop.f32.mrb[17].mxu1 }
 0x2d5   : > { %v943_v56 = vmax.f32 %v2559_v54, %v2561_v55 }
 0x2d7   : > { %944 = vmax.xlane.f32.xlu1 %v943_v56  ;;  %v2565_v57 = vpop.f32.mrb[18].mxu1 }
 0x2d8   : > { %v2567_v58 = vpop.f32.mrb[19].mxu1 }
 0x2d9   : > { %v946_v59 = vmax.f32 %v2565_v57, %v2567_v58 }
 0x2db   : > { %947 = vmax.xlane.f32.xlu0 %v946_v59  ;;  %v2571_v60 = vpop.f32.mrb[20].mxu1 }
 0x2dc   : > { %v2573_v61 = vpop.f32.mrb[21].mxu1 }
 0x2dd   : > { %v949_v62 = vmax.f32 %v2571_v60, %v2573_v61 }
 0x2df   : > { %950 = vmax.xlane.f32.xlu1 %v949_v62  ;;  %v2577_v63 = vpop.f32.mrb[22].mxu1 }
 0x2e0   : > { %v2579_v1 = vpop.f32.mrb[23].mxu1 }
 0x2e1   : > { %v952_v2 = vmax.f32 %v2577_v63, %v2579_v1 }
 0x2e3   : > { %953 = vmax.xlane.f32.xlu0 %v952_v2  ;;  %v2583_v3 = vpop.f32.mrb[24].mxu1 }
 0x2e4   : > { %v2585_v4 = vpop.f32.mrb[25].mxu1 }
 0x2e5   : > { %v955_v5 = vmax.f32 %v2583_v3, %v2585_v4 }
 0x2e7   : > { %956 = vmax.xlane.f32.xlu1 %v955_v5  ;;  %v2589_v6 = vpop.f32.mrb[26].mxu1 }
 0x2e8   : > { %v2591_v7 = vpop.f32.mrb[27].mxu1 }
 0x2e9   : > { %v958_v8 = vmax.f32 %v2589_v6, %v2591_v7 }
 0x2eb   : > { %959 = vmax.xlane.f32.xlu0 %v958_v8  ;;  %v2595_v9 = vpop.f32.mrb[28].mxu1 }
 0x2ec   : > { %v2597_v10 = vpop.f32.mrb[29].mxu1 }
 0x2ed   : > { %v961_v11 = vmax.f32 %v2595_v9, %v2597_v10 }
 0x2ef   : > { %962 = vmax.xlane.f32.xlu1 %v961_v11  ;;  %v2601_v12 = vpop.f32.mrb[30].mxu1 }
 0x2f0   : > { %v2603_v13 = vpop.f32.mrb[31].mxu1 }
 0x2f1   : > { %v964_v14 = vmax.f32 %v2601_v12, %v2603_v13 }
 0x2f3   : > { %965 = vmax.xlane.f32.xlu0 %v964_v14  ;;  %v2607_v15 = vpop.f32.mrb[32].mxu1 }
 0x2f4   : > { %v2609_v16 = vpop.f32.mrb[33].mxu1 }
 0x2f5   : > { %v967_v17 = vmax.f32 %v2607_v15, %v2609_v16 }
 0x2f7   : > { %968 = vmax.xlane.f32.xlu1 %v967_v17  ;;  %v2613_v18 = vpop.f32.mrb[34].mxu1 }
 0x2f8   : > { %v2615_v19 = vpop.f32.mrb[35].mxu1 }
 0x2f9   : > { %v970_v20 = vmax.f32 %v2613_v18, %v2615_v19 }
 0x2fb   : > { %971 = vmax.xlane.f32.xlu0 %v970_v20  ;;  %v2619_v21 = vpop.f32.mrb[36].mxu1 }
 0x2fc   : > { %v2621_v22 = vpop.f32.mrb[37].mxu1 }
 0x2fd   : > { %v973_v23 = vmax.f32 %v2619_v21, %v2621_v22 }
 0x2ff   : > { %974 = vmax.xlane.f32.xlu1 %v973_v23  ;;  %v2625_v24 = vpop.f32.mrb[38].mxu1 }
 0x300   : > { %v2627_v25 = vpop.f32.mrb[39].mxu1 }
 0x301   : > { %v976_v26 = vmax.f32 %v2625_v24, %v2627_v25 }
 0x303   : > { %977 = vmax.xlane.f32.xlu0 %v976_v26  ;;  %v2631_v27 = vpop.f32.mrb[40].mxu1 }
 0x304   : > { %v2633_v28 = vpop.f32.mrb[41].mxu1 }
 0x305   : > { %v979_v29 = vmax.f32 %v2631_v27, %v2633_v28 }
 0x307   : > { %980 = vmax.xlane.f32.xlu1 %v979_v29  ;;  %v2637_v30 = vpop.f32.mrb[42].mxu1 }
 0x308   : > { %v2639_v33 = vpop.f32.mrb[43].mxu1 }
 0x309   : > { %v982_v36 = vmax.f32 %v2637_v30, %v2639_v33 }
 0x30b   : > { %983 = vmax.xlane.f32.xlu0 %v982_v36  ;;  %v2643_v38 = vpop.f32.mrb[44].mxu1 }
 0x30c   : > { %v2645_v41 = vpop.f32.mrb[45].mxu1 }
 0x30d   : > { %v985_v44 = vmax.f32 %v2643_v38, %v2645_v41 }
 0x30f   : > { %986 = vmax.xlane.f32.xlu1 %v985_v44  ;;  %v2649_v47 = vpop.f32.mrb[46].mxu1 }
 0x310   : > { %v2651_v50 = vpop.f32.mrb[47].mxu1 }
 0x311   : > { %v988_v53 = vmax.f32 %v2649_v47, %v2651_v50 }
 0x313   : > { %989 = vmax.xlane.f32.xlu0 %v988_v53  ;;  %v2655_v56 = vpop.f32.mrb[48].mxu1 }
 0x314   : > { %v2657_v59 = vpop.f32.mrb[49].mxu1 }
 0x315   : > { %v991_v62 = vmax.f32 %v2655_v56, %v2657_v59 }
 0x317   : > { %992 = vmax.xlane.f32.xlu1 %v991_v62  ;;  %v2661_v2 = vpop.f32.mrb[50].mxu1 }
 0x318   : > { %2888 = vst [vmem:[#allocation17_spill] sm:$0xff] %v2661_v2  ;;  %v2663_v5 = vpop.f32.mrb[51].mxu1 }
 0x319   : > { %2889 = vst [vmem:[#allocation18_spill] sm:$0xff] %v2663_v5  ;;  %v994_v8 = vmax.f32 %v2661_v2, %v2663_v5 }
 0x31b   : > { %995 = vmax.xlane.f32.xlu0 %v994_v8  ;;  %v2667_v11 = vpop.f32.mrb[52].mxu1 }
 0x31c   : > { %2890 = vst [vmem:[#allocation19_spill] sm:$0xff] %v2667_v11  ;;  %v2669_v14 = vpop.f32.mrb[53].mxu1 }
 0x31d   : > { %2891 = vst [vmem:[#allocation20_spill] sm:$0xff] %v2669_v14  ;;  %v997_v17 = vmax.f32 %v2667_v11, %v2669_v14 }
 0x31f   : > { %998 = vmax.xlane.f32.xlu1 %v997_v17  ;;  %v2673_v20 = vpop.f32.mrb[54].mxu1 }
 0x320   : > { %2892 = vst [vmem:[#allocation21_spill] sm:$0xff] %v2673_v20  ;;  %v2675_v23 = vpop.f32.mrb[55].mxu1 }
 0x321   : > { %2893 = vst [vmem:[#allocation22_spill] sm:$0xff] %v2675_v23  ;;  %v1000_v26 = vmax.f32 %v2673_v20, %v2675_v23 }
 0x323   : > { %1001 = vmax.xlane.f32.xlu0 %v1000_v26  ;;  %v2679_v29 = vpop.f32.mrb[56].mxu1 }
 0x324   : > { %2894 = vst [vmem:[#allocation23_spill] sm:$0xff] %v2679_v29  ;;  %v2681_v36 = vpop.f32.mrb[57].mxu1 }
 0x325   : > { %2895 = vst [vmem:[#allocation24_spill] sm:$0xff] %v2681_v36  ;;  %v1003_v44 = vmax.f32 %v2679_v29, %v2681_v36 }
 0x327   : > { %1004 = vmax.xlane.f32.xlu1 %v1003_v44  ;;  %v2685_v53 = vpop.f32.mrb[58].mxu1 }
 0x328   : > { %2896 = vst [vmem:[#allocation25_spill] sm:$0xff] %v2685_v53  ;;  %v2687_v62 = vpop.f32.mrb[59].mxu1 }
 0x329   : > { %2897 = vst [vmem:[#allocation26_spill] sm:$0xff] %v2687_v62  ;;  %v1006_v8 = vmax.f32 %v2685_v53, %v2687_v62 }
 0x32b   : > { %1007 = vmax.xlane.f32.xlu0 %v1006_v8  ;;  %v2691_v17 = vpop.f32.mrb[60].mxu1 }
 0x32c   : > { %2898 = vst [vmem:[#allocation27_spill] sm:$0xff] %v2691_v17  ;;  %v2693_v23 = vpop.f32.mrb[61].mxu1 }
 0x32d   : > { %2899 = vst [vmem:[#allocation28_spill] sm:$0xff] %v2693_v23  ;;  %v1009_v26 = vmax.f32 %v2691_v17, %v2693_v23 }
 0x32f   : > { %1010 = vmax.xlane.f32.xlu1 %v1009_v26  ;;  %v2697_v20 = vpop.f32.mrb[62].mxu1 }
 0x330   : > { %v2699_v36 = vpop.f32.mrb[63].mxu1 }
 0x331   : > { %2900 = vst [vmem:[#allocation29_spill] sm:$0xff] %v2699_v36  ;;  %v1012_v44 = vmax.f32 %v2697_v20, %v2699_v36 }
 0x333   : > { %1013 = vmax.xlane.f32.xlu0 %v1012_v44 }
 0x344   : > { %v921_v29 = vpop.xlane.xlu0 %920 }
 0x345   : > { %v1015_v62 = vsub.f32 %v2511_v31, %v921_v29  ;;  %v1016_v8 = vsub.f32 %v2513_v32, %v921_v29 }
 0x347   : > { %v1079_v53 = vmul.f32 1.442695, %v1015_v62  ;;  %v1081_v14 = vmul.f32 1.442695, %v1016_v8 }
 0x348   : > { %v924_v11 = vpop.xlane.xlu1 %923 }
 0x349   : > { %v1017_v5 = vsub.f32 %v2517_v34, %v924_v11  ;;  %v1018_v26 = vsub.f32 %v2519_v35, %v924_v11  ;;  %1827 = vpow2.f32 %v1079_v53 }
 0x34a   : > { %1829 = vpow2.f32 %v1081_v14 }
 0x34b   : > { %v1083_v23 = vmul.f32 1.442695, %v1017_v5  ;;  %v1085_v17 = vmul.f32 1.442695, %v1018_v26 }
 0x34c   : > { %v927_v2 = vpop.xlane.xlu0 %926 }
 0x34d   : > { %1831 = vpow2.f32 %v1083_v23  ;;  %v1019_v44 = vsub.f32 %v2523_v37, %v927_v2  ;;  %v1020_v36 = vsub.f32 %v2525_v0, %v927_v2  ;;  %v2144_v2 = vmov 1.0  }
 0x34e   : > { %1833 = vpow2.f32 %v1085_v17  ;;  %1271 = vmatprep.mubr.f32.mxu0 %v2144_v2 }
 0x34f   : > { %v1087_v31 = vmul.f32 1.442695, %v1019_v44  ;;  %v1089_v32 = vmul.f32 1.442695, %v1020_v36 }
 0x350   : > { %v930_v29 = vpop.xlane.xlu0 %929 }
 0x351   : > { %v1021_v62 = vsub.f32 %v2529_v39, %v930_v29  ;;  %v1022_v34 = vsub.f32 %v2531_v40, %v930_v29  ;;  %1835 = vpow2.f32 %v1087_v31  ;;  %v357_v39 = vld [vmem:[%s2715_s27 + $0x8] sm:$0xff] }
 0x352   : > { %1837 = vpow2.f32 %v1089_v32  ;;  %1342 = vmatprep.mubr.f32.mxu1 %v357_v39 }
 0x353   : > { %v1091_v35 = vmul.f32 1.442695, %v1021_v62  ;;  %v1093_v5 = vmul.f32 1.442695, %v1022_v34  ;;  %v1828_v14 = vpop.eup %1827 }
 0x354   : > { %v933_v11 = vpop.xlane.xlu1 %932  ;;  %v1830_v23 = vpop.eup %1829 }
 0x355   : > { %1839 = vpow2.f32 %v1091_v35  ;;  %v1023_v37 = vsub.f32 %v2535_v42, %v933_v11  ;;  %v1024_v0 = vsub.f32 %v2537_v43, %v933_v11 }
 0x356   : > { %1841 = vpow2.f32 %v1093_v5 }
 0x357   : > { %v1832_v40 = vpop.eup %1831  ;;  %v1095_v36 = vmul.f32 1.442695, %v1023_v37  ;;  %v1097_v17 = vmul.f32 1.442695, %v1024_v0 }
 0x358   : > { %v1834_v53 = vpop.eup %1833  ;;  %v936_v8 = vpop.xlane.xlu0 %935  ;;  %v1620_v26 = vpack.c.bf16 %v1832_v40, %v1828_v14 }
 0x359   : > { %v1025_v42 = vsub.f32 %v2541_v45, %v936_v8  ;;  %v1026_v43 = vsub.f32 %v2543_v46, %v936_v8  ;;  %v1618_v44 = vpack.c.bf16 %v1834_v53, %v1830_v23  ;;  %1843 = vpow2.f32 %v1095_v36 }
 0x35a   : > { %1845 = vpow2.f32 %v1097_v17 }
 0x35b   : > { %v1099_v31 = vmul.f32 1.442695, %v1025_v42  ;;  %v1101_v32 = vmul.f32 1.442695, %v1026_v43  ;;  %1619 = vmatprep.subr.bf16.mxu0 %v1618_v44  ;;  %1683 = vmatprep.subr.bf16.mxu1 %v1618_v44  ;;  %v1836_v62 = vpop.eup %1835 }
 0x35c   : > { %1621 = vmatpush1.bf16.xpose.msra.mxu0 %v1620_v26  ;;  %1685 = vmatpush1.bf16.xpose.msra.mxu1 %v1620_v26  ;;  %v939_v29 = vpop.xlane.xlu1 %938  ;;  %v1838_v5 = vpop.eup %1837 }
 0x35d   : > { %1847 = vpow2.f32 %v1099_v31  ;;  %v1027_v34 = vsub.f32 %v2547_v48, %v939_v29  ;;  %v1028_v35 = vsub.f32 %v2549_v49, %v939_v29 }
 0x35e   : > { %1849 = vpow2.f32 %v1101_v32 }
 0x35f   : > { %v1840_v45 = vpop.eup %1839  ;;  %v1103_v46 = vmul.f32 1.442695, %v1027_v34  ;;  %v1105_v14 = vmul.f32 1.442695, %v1028_v35 }
 0x360   : > { %v1842_v11 = vpop.eup %1841  ;;  %v942_v37 = vpop.xlane.xlu0 %941  ;;  %v1624_v0 = vpack.c.bf16 %v1840_v45, %v1836_v62 }
 0x361   : > { %v1029_v39 = vsub.f32 %v2553_v51, %v942_v37  ;;  %v1030_v23 = vsub.f32 %v2555_v52, %v942_v37  ;;  %v1622_v40 = vpack.c.bf16 %v1842_v11, %v1838_v5  ;;  %1851 = vpow2.f32 %v1103_v46 }
 0x362   : > { %1853 = vpow2.f32 %v1105_v14 }
 0x363   : > { %v1107_v36 = vmul.f32 1.442695, %v1029_v39  ;;  %v1109_v53 = vmul.f32 1.442695, %v1030_v23  ;;  %1623 = vmatprep.subr.bf16.mxu0 %v1622_v40  ;;  %1687 = vmatprep.subr.bf16.mxu1 %v1622_v40  ;;  %v1844_v49 = vpop.eup %1843 }
 0x364   : > { %1625 = vmatpush1.bf16.xpose.msra.mxu0 %v1624_v0  ;;  %1689 = vmatpush1.bf16.xpose.msra.mxu1 %v1624_v0  ;;  %v945_v48 = vpop.xlane.xlu1 %944  ;;  %v1846_v26 = vpop.eup %1845 }
 0x365   : > { %1855 = vpow2.f32 %v1107_v36  ;;  %v1031_v17 = vsub.f32 %v2559_v54, %v945_v48  ;;  %v1032_v8 = vsub.f32 %v2561_v55, %v945_v48 }
 0x366   : > { %1857 = vpow2.f32 %v1109_v53 }
 0x367   : > { %v1848_v51 = vpop.eup %1847  ;;  %v1111_v52 = vmul.f32 1.442695, %v1031_v17  ;;  %v1113_v43 = vmul.f32 1.442695, %v1032_v8 }
 0x368   : > { %v1850_v42 = vpop.eup %1849  ;;  %v948_v44 = vpop.xlane.xlu0 %947  ;;  %v1628_v31 = vpack.c.bf16 %v1848_v51, %v1844_v49 }
 0x369   : > { %v1033_v32 = vsub.f32 %v2565_v57, %v948_v44  ;;  %v1034_v29 = vsub.f32 %v2567_v58, %v948_v44  ;;  %v1626_v62 = vpack.c.bf16 %v1850_v42, %v1846_v26  ;;  %1859 = vpow2.f32 %v1111_v52 }
 0x36a   : > { %1861 = vpow2.f32 %v1113_v43 }
 0x36b   : > { %v1115_v34 = vmul.f32 1.442695, %v1033_v32  ;;  %v1117_v35 = vmul.f32 1.442695, %v1034_v29  ;;  %1627 = vmatprep.subr.bf16.mxu0 %v1626_v62  ;;  %1691 = vmatprep.subr.bf16.mxu1 %v1626_v62  ;;  %v1852_v55 = vpop.eup %1851 }
 0x36c   : > { %1629 = vmatpush1.bf16.xpose.msra.mxu0 %v1628_v31  ;;  %1693 = vmatpush1.bf16.xpose.msra.mxu1 %v1628_v31  ;;  %v951_v54 = vpop.xlane.xlu1 %950  ;;  %v1854_v46 = vpop.eup %1853 }
 0x36d   : > { %1863 = vpow2.f32 %v1115_v34  ;;  %v1035_v5 = vsub.f32 %v2571_v60, %v951_v54  ;;  %v1036_v45 = vsub.f32 %v2573_v61, %v951_v54 }
 0x36e   : > { %1865 = vpow2.f32 %v1117_v35 }
 0x36f   : > { %v1856_v57 = vpop.eup %1855  ;;  %v1119_v58 = vmul.f32 1.442695, %v1035_v5  ;;  %v1121_v14 = vmul.f32 1.442695, %v1036_v45 }
 0x370   : > { %v1858_v11 = vpop.eup %1857  ;;  %v954_v37 = vpop.xlane.xlu0 %953  ;;  %v1632_v0 = vpack.c.bf16 %v1856_v57, %v1852_v55 }
 0x371   : > { %v1037_v39 = vsub.f32 %v2577_v63, %v954_v37  ;;  %v1038_v23 = vsub.f32 %v2579_v1, %v954_v37  ;;  %v1630_v40 = vpack.c.bf16 %v1858_v11, %v1854_v46  ;;  %1867 = vpow2.f32 %v1119_v58 }
 0x372   : > { %1869 = vpow2.f32 %v1121_v14 }
 0x373   : > { %v1123_v36 = vmul.f32 1.442695, %v1037_v39  ;;  %v1125_v53 = vmul.f32 1.442695, %v1038_v23  ;;  %1631 = vmatprep.subr.bf16.mxu0 %v1630_v40  ;;  %1695 = vmatprep.subr.bf16.mxu1 %v1630_v40  ;;  %v1860_v61 = vpop.eup %1859 }
 0x374   : > { %1633 = vmatpush1.bf16.xpose.msra.mxu0 %v1632_v0  ;;  %1697 = vmatpush1.bf16.xpose.msra.mxu1 %v1632_v0  ;;  %v957_v60 = vpop.xlane.xlu1 %956  ;;  %v1862_v17 = vpop.eup %1861 }
 0x375   : > { %1871 = vpow2.f32 %v1123_v36  ;;  %v1039_v48 = vsub.f32 %v2583_v3, %v957_v60  ;;  %v1040_v49 = vsub.f32 %v2585_v4, %v957_v60 }
 0x376   : > { %1873 = vpow2.f32 %v1125_v53 }
 0x377   : > { %v1864_v63 = vpop.eup %1863  ;;  %v1127_v1 = vmul.f32 1.442695, %v1039_v48  ;;  %v1129_v26 = vmul.f32 1.442695, %v1040_v49 }
 0x378   : > { %v1866_v8 = vpop.eup %1865  ;;  %v960_v51 = vpop.xlane.xlu0 %959  ;;  %v1636_v52 = vpack.c.bf16 %v1864_v63, %v1860_v61 }
 0x379   : > { %v1041_v42 = vsub.f32 %v2589_v6, %v960_v51  ;;  %v1042_v43 = vsub.f32 %v2591_v7, %v960_v51  ;;  %v1634_v44 = vpack.c.bf16 %v1866_v8, %v1862_v17  ;;  %1875 = vpow2.f32 %v1127_v1 }
 0x37a   : > { %1877 = vpow2.f32 %v1129_v26 }
 0x37b   : > { %v1131_v31 = vmul.f32 1.442695, %v1041_v42  ;;  %v1133_v32 = vmul.f32 1.442695, %v1042_v43  ;;  %1635 = vmatprep.subr.bf16.mxu0 %v1634_v44  ;;  %1699 = vmatprep.subr.bf16.mxu1 %v1634_v44  ;;  %v1868_v4 = vpop.eup %1867 }
 0x37c   : > { %1637 = vmatpush1.bf16.xpose.msra.mxu0 %v1636_v52  ;;  %1701 = vmatpush1.bf16.xpose.msra.mxu1 %v1636_v52  ;;  %v963_v3 = vpop.xlane.xlu1 %962  ;;  %v1870_v34 = vpop.eup %1869 }
 0x37d   : > { %1879 = vpow2.f32 %v1131_v31  ;;  %v1043_v29 = vsub.f32 %v2595_v9, %v963_v3  ;;  %v1044_v62 = vsub.f32 %v2597_v10, %v963_v3 }
 0x37e   : > { %1881 = vpow2.f32 %v1133_v32 }
 0x37f   : > { %v1872_v6 = vpop.eup %1871  ;;  %v1135_v7 = vmul.f32 1.442695, %v1043_v29  ;;  %v1137_v54 = vmul.f32 1.442695, %v1044_v62 }
 0x380   : > { %v1874_v35 = vpop.eup %1873  ;;  %v966_v55 = vpop.xlane.xlu0 %965  ;;  %v1640_v5 = vpack.c.bf16 %v1872_v6, %v1868_v4 }
 0x381   : > { %v1045_v45 = vsub.f32 %v2601_v12, %v966_v55  ;;  %v1046_v46 = vsub.f32 %v2603_v13, %v966_v55  ;;  %v1638_v57 = vpack.c.bf16 %v1874_v35, %v1870_v34  ;;  %1883 = vpow2.f32 %v1135_v7 }
 0x382   : > { %1885 = vpow2.f32 %v1137_v54 }
 0x383   : > { %v1139_v58 = vmul.f32 1.442695, %v1045_v45  ;;  %v1141_v11 = vmul.f32 1.442695, %v1046_v46  ;;  %1639 = vmatprep.subr.bf16.mxu0 %v1638_v57  ;;  %1703 = vmatprep.subr.bf16.mxu1 %v1638_v57  ;;  %v1876_v10 = vpop.eup %1875 }
 0x384   : > { %1641 = vmatpush1.bf16.xpose.msra.mxu0 %v1640_v5  ;;  %1705 = vmatpush1.bf16.xpose.msra.mxu1 %v1640_v5  ;;  %v969_v9 = vpop.xlane.xlu1 %968  ;;  %v1878_v0 = vpop.eup %1877 }
 0x385   : > { %1887 = vpow2.f32 %v1139_v58  ;;  %v1047_v14 = vsub.f32 %v2607_v15, %v969_v9  ;;  %v1048_v37 = vsub.f32 %v2609_v16, %v969_v9 }
 0x386   : > { %1889 = vpow2.f32 %v1141_v11 }
 0x387   : > { %v1880_v12 = vpop.eup %1879  ;;  %v1143_v13 = vmul.f32 1.442695, %v1047_v14  ;;  %v1145_v23 = vmul.f32 1.442695, %v1048_v37 }
 0x388   : > { %v1882_v39 = vpop.eup %1881  ;;  %v972_v40 = vpop.xlane.xlu0 %971  ;;  %v1644_v36 = vpack.c.bf16 %v1880_v12, %v1876_v10 }
 0x389   : > { %v1049_v53 = vsub.f32 %v2613_v18, %v972_v40  ;;  %v1050_v60 = vsub.f32 %v2615_v19, %v972_v40  ;;  %v1642_v61 = vpack.c.bf16 %v1882_v39, %v1878_v0  ;;  %1891 = vpow2.f32 %v1143_v13 }
 0x38a   : > { %1893 = vpow2.f32 %v1145_v23 }
 0x38b   : > { %v1147_v48 = vmul.f32 1.442695, %v1049_v53  ;;  %v1149_v49 = vmul.f32 1.442695, %v1050_v60  ;;  %1643 = vmatprep.subr.bf16.mxu0 %v1642_v61  ;;  %1707 = vmatprep.subr.bf16.mxu1 %v1642_v61  ;;  %v1884_v16 = vpop.eup %1883 }
 0x38c   : > { %1645 = vmatpush1.bf16.xpose.msra.mxu0 %v1644_v36  ;;  %1709 = vmatpush1.bf16.xpose.msra.mxu1 %v1644_v36  ;;  %v975_v15 = vpop.xlane.xlu1 %974  ;;  %v1886_v1 = vpop.eup %1885 }
 0x38d   : > { %1895 = vpow2.f32 %v1147_v48  ;;  %v1051_v17 = vsub.f32 %v2619_v21, %v975_v15  ;;  %v1052_v63 = vsub.f32 %v2621_v22, %v975_v15 }
 0x38e   : > { %1897 = vpow2.f32 %v1149_v49  ;;  %v2901_v49 = vld [vmem:[#allocation17_spill] sm:$0xff] }
 0x38f   : > { %v1888_v18 = vpop.eup %1887  ;;  %v1151_v19 = vmul.f32 1.442695, %v1051_v17  ;;  %v1153_v26 = vmul.f32 1.442695, %v1052_v63 }
 0x390   : > { %v1890_v8 = vpop.eup %1889  ;;  %v978_v51 = vpop.xlane.xlu0 %977  ;;  %v1648_v52 = vpack.c.bf16 %v1888_v18, %v1884_v16  ;;  %v2902_v16 = vld [vmem:[#allocation18_spill] sm:$0xff] }
 0x391   : > { %v1053_v42 = vsub.f32 %v2625_v24, %v978_v51  ;;  %v1054_v43 = vsub.f32 %v2627_v25, %v978_v51  ;;  %v1646_v44 = vpack.c.bf16 %v1890_v8, %v1886_v1  ;;  %1899 = vpow2.f32 %v1151_v19  ;;  %v2903_v19 = vld [vmem:[#allocation19_spill] sm:$0xff] }
 0x392   : > { %1901 = vpow2.f32 %v1153_v26  ;;  %v2904_v26 = vld [vmem:[#allocation20_spill] sm:$0xff] }
 0x393   : > { %v1155_v31 = vmul.f32 1.442695, %v1053_v42  ;;  %v1157_v32 = vmul.f32 1.442695, %v1054_v43  ;;  %1647 = vmatprep.subr.bf16.mxu0 %v1646_v44  ;;  %1711 = vmatprep.subr.bf16.mxu1 %v1646_v44  ;;  %v1892_v22 = vpop.eup %1891 }
 0x394   : > { %1649 = vmatpush1.bf16.xpose.msra.mxu0 %v1648_v52  ;;  %1713 = vmatpush1.bf16.xpose.msra.mxu1 %v1648_v52  ;;  %v981_v21 = vpop.xlane.xlu1 %980  ;;  %v1894_v29 = vpop.eup %1893 }
 0x395   : > { %1903 = vpow2.f32 %v1155_v31  ;;  %v1055_v3 = vsub.f32 %v2631_v27, %v981_v21  ;;  %v1056_v4 = vsub.f32 %v2633_v28, %v981_v21 }
 0x396   : > { %1905 = vpow2.f32 %v1157_v32 }
 0x397   : > { %v1896_v24 = vpop.eup %1895  ;;  %v1159_v25 = vmul.f32 1.442695, %v1055_v3  ;;  %v1161_v34 = vmul.f32 1.442695, %v1056_v4  ;;  %v2906_v4 = vld [vmem:[#allocation22_spill] sm:$0xff] }
 0x398   : > { %v1898_v62 = vpop.eup %1897  ;;  %v984_v6 = vpop.xlane.xlu0 %983  ;;  %v1652_v7 = vpack.c.bf16 %v1896_v24, %v1892_v22  ;;  %v2905_v22 = vld [vmem:[#allocation21_spill] sm:$0xff] }
 0x399   : > { %v1057_v35 = vsub.f32 %v2637_v30, %v984_v6  ;;  %v1058_v54 = vsub.f32 %v2639_v33, %v984_v6  ;;  %v1650_v55 = vpack.c.bf16 %v1898_v62, %v1894_v29  ;;  %1907 = vpow2.f32 %v1159_v25 }
 0x39a   : > { %1909 = vpow2.f32 %v1161_v34 }
 0x39b   : > { %v1163_v5 = vmul.f32 1.442695, %v1057_v35  ;;  %v1165_v45 = vmul.f32 1.442695, %v1058_v54  ;;  %1651 = vmatprep.subr.bf16.mxu0 %v1650_v55  ;;  %1715 = vmatprep.subr.bf16.mxu1 %v1650_v55  ;;  %v1900_v28 = vpop.eup %1899  ;;  %v2908_v54 = vld [vmem:[#allocation24_spill] sm:$0xff] }
 0x39c   : > { %1653 = vmatpush1.bf16.xpose.msra.mxu0 %v1652_v7  ;;  %1717 = vmatpush1.bf16.xpose.msra.mxu1 %v1652_v7  ;;  %v987_v27 = vpop.xlane.xlu1 %986  ;;  %v1902_v58 = vpop.eup %1901  ;;  %v2907_v7 = vld [vmem:[#allocation23_spill] sm:$0xff] }
 0x39d   : > { %1911 = vpow2.f32 %v1163_v5  ;;  %v1059_v46 = vsub.f32 %v2643_v38, %v987_v27  ;;  %v1060_v57 = vsub.f32 %v2645_v41, %v987_v27 }
 0x39e   : > { %1913 = vpow2.f32 %v1165_v45 }
 0x39f   : > { %v1904_v30 = vpop.eup %1903  ;;  %v1167_v33 = vmul.f32 1.442695, %v1059_v46  ;;  %v1169_v9 = vmul.f32 1.442695, %v1060_v57 }
 0x3a0   : > { %v1906_v11 = vpop.eup %1905  ;;  %v990_v10 = vpop.xlane.xlu0 %989  ;;  %v1656_v14 = vpack.c.bf16 %v1904_v30, %v1900_v28  ;;  %v2909_v30 = vld [vmem:[#allocation25_spill] sm:$0xff] }
 0x3a1   : > { %v1061_v37 = vsub.f32 %v2649_v47, %v990_v10  ;;  %v1062_v0 = vsub.f32 %v2651_v50, %v990_v10  ;;  %v1654_v12 = vpack.c.bf16 %v1906_v11, %v1902_v58  ;;  %1915 = vpow2.f32 %v1167_v33  ;;  %v2910_v11 = vld [vmem:[#allocation26_spill] sm:$0xff] }
 0x3a2   : > { %1917 = vpow2.f32 %v1169_v9 }
 0x3a3   : > { %v1171_v13 = vmul.f32 1.442695, %v1061_v37  ;;  %v1173_v39 = vmul.f32 1.442695, %v1062_v0  ;;  %1655 = vmatprep.subr.bf16.mxu0 %v1654_v12  ;;  %1719 = vmatprep.subr.bf16.mxu1 %v1654_v12  ;;  %v1908_v41 = vpop.eup %1907 }
 0x3a4   : > { %1657 = vmatpush1.bf16.xpose.msra.mxu0 %v1656_v14  ;;  %1721 = vmatpush1.bf16.xpose.msra.mxu1 %v1656_v14  ;;  %v993_v38 = vpop.xlane.xlu1 %992  ;;  %v1910_v36 = vpop.eup %1909 }
 0x3a5   : > { %1919 = vpow2.f32 %v1171_v13  ;;  %v1063_v23 = vsub.f32 %v2655_v56, %v993_v38  ;;  %v1064_v40 = vsub.f32 %v2657_v59, %v993_v38  ;;  %v2911_v13 = vld [vmem:[#allocation27_spill] sm:$0xff]  ;;  %v2912_v38 = vld [vmem:[#allocation28_spill] sm:$0xff] }
 0x3a6   : > { %1921 = vpow2.f32 %v1173_v39 }
 0x3a7   : > { %v1912_v47 = vpop.eup %1911  ;;  %v1175_v50 = vmul.f32 1.442695, %v1063_v23  ;;  %v1177_v60 = vmul.f32 1.442695, %v1064_v40 }
 0x3a8   : > { %v1914_v53 = vpop.eup %1913  ;;  %v996_v61 = vpop.xlane.xlu0 %995  ;;  %v1660_v48 = vpack.c.bf16 %v1912_v47, %v1908_v41 }
 0x3a9   : > { %v1065_v15 = vsub.f32 %v2901_v49, %v996_v61  ;;  %v1066_v17 = vsub.f32 %v2902_v16, %v996_v61  ;;  %v1658_v63 = vpack.c.bf16 %v1914_v53, %v1910_v36  ;;  %1923 = vpow2.f32 %v1175_v50 }
 0x3aa   : > { %1925 = vpow2.f32 %v1177_v60 }
 0x3ab   : > { %v1179_v1 = vmul.f32 1.442695, %v1065_v15  ;;  %v1181_v18 = vmul.f32 1.442695, %v1066_v17  ;;  %1659 = vmatprep.subr.bf16.mxu0 %v1658_v63  ;;  %1723 = vmatprep.subr.bf16.mxu1 %v1658_v63  ;;  %v1916_v59 = vpop.eup %1915 }
 0x3ac   : > { %1661 = vmatpush1.bf16.xpose.msra.mxu0 %v1660_v48  ;;  %1725 = vmatpush1.bf16.xpose.msra.mxu1 %v1660_v48  ;;  %v999_v56 = vpop.xlane.xlu1 %998  ;;  %v1918_v52 = vpop.eup %1917  ;;  %v2913_v48 = vld [vmem:[#allocation29_spill] sm:$0xff] }
 0x3ad   : > { %1927 = vpow2.f32 %v1179_v1  ;;  %v1067_v8 = vsub.f32 %v2903_v19, %v999_v56  ;;  %v1068_v51 = vsub.f32 %v2904_v26, %v999_v56 }
 0x3ae   : > { %1929 = vpow2.f32 %v1181_v18 }
 0x3af   : > { %v1920_v42 = vpop.eup %1919  ;;  %v1183_v43 = vmul.f32 1.442695, %v1067_v8  ;;  %v1185_v31 = vmul.f32 1.442695, %v1068_v51 }
 0x3b0   : > { %v1922_v44 = vpop.eup %1921  ;;  %v1002_v32 = vpop.xlane.xlu0 %1001  ;;  %v1664_v21 = vpack.c.bf16 %v1920_v42, %v1916_v59 }
 0x3b1   : > { %v1069_v3 = vsub.f32 %v2905_v22, %v1002_v32  ;;  %v1070_v29 = vsub.f32 %v2906_v4, %v1002_v32  ;;  %v1662_v24 = vpack.c.bf16 %v1922_v44, %v1918_v52  ;;  %1931 = vpow2.f32 %v1183_v43  ;;  %v356_v43 = vld [vmem:[%s2715_s27] sm:$0xff]  ;;  %v359_v44 = vld [vmem:[%s2715_s27 + $0x18] sm:$0xff]  ;;  %v361_v32 = vld [vmem:[%s2715_s27 + $0x28] sm:$0xff] }
 0x3b2   : > { %1933 = vpow2.f32 %v1185_v31  ;;  %v358_v31 = vld [vmem:[%s2715_s27 + $0x10] sm:$0xff]  ;;  %v363_v22 = vld [vmem:[%s2715_s27 + $0x38] sm:$0xff] }
 0x3b3   : > { %v1187_v25 = vmul.f32 1.442695, %v1069_v3  ;;  %v1189_v62 = vmul.f32 1.442695, %v1070_v29  ;;  %1663 = vmatprep.subr.bf16.mxu0 %v1662_v24  ;;  %1727 = vmatprep.subr.bf16.mxu1 %v1662_v24  ;;  %v1924_v6 = vpop.eup %1923  ;;  %v362_v3 = vld [vmem:[%s2715_s27 + $0x30] sm:$0xff]  ;;  %v1369_v24 = vlaneseq }
 0x3b4   : > { %1665 = vmatpush1.bf16.xpose.msra.mxu0 %v1664_v21  ;;  %1729 = vmatpush1.bf16.xpose.msra.mxu1 %v1664_v21  ;;  %v1005_v34 = vpop.xlane.xlu1 %1004  ;;  %v1926_v5 = vpop.eup %1925  ;;  %v360_v21 = vld [vmem:[%s2715_s27 + $0x20] sm:$0xff] }
 0x3b5   : > { %1935 = vpow2.f32 %v1187_v25  ;;  %v1071_v35 = vsub.f32 %v2907_v7, %v1005_v34  ;;  %v1072_v55 = vsub.f32 %v2908_v54, %v1005_v34 }
 0x3b6   : > { %1937 = vpow2.f32 %v1189_v62  ;;  %v1370_v62 = vshrl.u32 %v1369_v24, 7 }
 0x3b7   : > { %v1928_v45 = vpop.eup %1927  ;;  %v1191_v27 = vmul.f32 1.442695, %v1071_v35  ;;  %v1193_v46 = vmul.f32 1.442695, %v1072_v55 }
 0x3b8   : > { %v1930_v28 = vpop.eup %1929  ;;  %v1008_v57 = vpop.xlane.xlu0 %1007  ;;  %v1668_v58 = vpack.c.bf16 %v1928_v45, %v1924_v6  ;;  %v1371_v7 = vsub.s32 0, %v1370_v62 }
 0x3b9   : > { %v1073_v33 = vsub.f32 %v2909_v30, %v1008_v57  ;;  %v1074_v9 = vsub.f32 %v2910_v11, %v1008_v57  ;;  %v1666_v10 = vpack.c.bf16 %v1930_v28, %v1926_v5  ;;  %1939 = vpow2.f32 %v1191_v27 }
 0x3ba   : > { %1941 = vpow2.f32 %v1193_v46 }
 0x3bb   : > { %v1195_v14 = vmul.f32 1.442695, %v1073_v33  ;;  %v1197_v37 = vmul.f32 1.442695, %v1074_v9  ;;  %1667 = vmatprep.subr.bf16.mxu0 %v1666_v10  ;;  %1731 = vmatprep.subr.bf16.mxu1 %v1666_v10  ;;  %v1932_v12 = vpop.eup %1931 }
 0x3bc   : > { %1669 = vmatpush1.bf16.xpose.msra.mxu0 %v1668_v58  ;;  %1733 = vmatpush1.bf16.xpose.msra.mxu1 %v1668_v58  ;;  %v1011_v0 = vpop.xlane.xlu1 %1010  ;;  %v1934_v23 = vpop.eup %1933 }
 0x3bd   : > { %1943 = vpow2.f32 %v1195_v14  ;;  %v1075_v39 = vsub.f32 %v2911_v13, %v1011_v0  ;;  %v1076_v41 = vsub.f32 %v2912_v38, %v1011_v0 }
 0x3be   : > { %1945 = vpow2.f32 %v1197_v37 }
 0x3bf   : > { %v1936_v40 = vpop.eup %1935  ;;  %v1199_v36 = vmul.f32 1.442695, %v1075_v39  ;;  %v1201_v50 = vmul.f32 1.442695, %v1076_v41 }
 0x3c0   : > { %v1938_v47 = vpop.eup %1937  ;;  %v1014_v53 = vpop.xlane.xlu0 %1013  ;;  %v1672_v60 = vpack.c.bf16 %v1936_v40, %v1932_v12 }
 0x3c1   : > { %v1077_v61 = vsub.f32 %v2697_v20, %v1014_v53  ;;  %v1078_v49 = vsub.f32 %v2913_v48, %v1014_v53  ;;  %v1670_v15 = vpack.c.bf16 %v1938_v47, %v1934_v23  ;;  %1947 = vpow2.f32 %v1199_v36 }
 0x3c2   : > { %1949 = vpow2.f32 %v1201_v50 }
 0x3c3   : > { %v1203_v16 = vmul.f32 1.442695, %v1077_v61  ;;  %v1205_v17 = vmul.f32 1.442695, %v1078_v49  ;;  %1671 = vmatprep.subr.bf16.mxu0 %v1670_v15  ;;  %1735 = vmatprep.subr.bf16.mxu1 %v1670_v15  ;;  %v1940_v63 = vpop.eup %1939 }
 0x3c4   : > { %1673 = vmatpush1.bf16.xpose.msra.mxu0 %v1672_v60  ;;  %1737 = vmatpush1.bf16.xpose.msra.mxu1 %v1672_v60  ;;  %v1942_v1 = vpop.eup %1941 }
 0x3c5   : > { %1951 = vpow2.f32 %v1203_v16 }
 0x3c6   : > { %1953 = vpow2.f32 %v1205_v17 }
 0x3c7   : > { %v1944_v18 = vpop.eup %1943 }
 0x3c8   : > { %v1946_v56 = vpop.eup %1945  ;;  %v1676_v59 = vpack.c.bf16 %v1944_v18, %v1940_v63 }
 0x3c9   : > { %v1674_v20 = vpack.c.bf16 %v1946_v56, %v1942_v1 }
 0x3cb   : > { %1675 = vmatprep.subr.bf16.mxu0 %v1674_v20  ;;  %1739 = vmatprep.subr.bf16.mxu1 %v1674_v20  ;;  %v1948_v19 = vpop.eup %1947 }
 0x3cc   : > { %1677 = vmatpush1.bf16.xpose.msra.mxu0 %v1676_v59  ;;  %1741 = vmatpush1.bf16.xpose.msra.mxu1 %v1676_v59  ;;  %v1950_v8 = vpop.eup %1949 }
 0x3cf   : > { %v1952_v26 = vpop.eup %1951 }
 0x3d0   : > { %v1954_v51 = vpop.eup %1953  ;;  %v1680_v52 = vpack.c.bf16 %v1952_v26, %v1948_v19 }
 0x3d1   : > { %v1678_v42 = vpack.c.bf16 %v1954_v51, %v1950_v8 }
 0x3d3   : > { %1679 = vmatprep.subr.bf16.mxu0 %v1678_v42  ;;  %1743 = vmatprep.subr.bf16.mxu1 %v1678_v42 }
 0x3d4   : > { %1681 = vmatpush1.bf16.xpose.msra.mxu0 %v1680_v52  ;;  %1745 = vmatpush1.bf16.xpose.msra.mxu1 %v1680_v52 }
 0x3db   : > { %1272 = vmatmul.mubr.f32.vlgmr.msra.gmra.mrb[8].mxu0 %v2144_v2  ;;  %1343 = vmatmul.mubr.f32.vlgmr.msra.gmra.mrb[64].mxu1 %v356_v43 }
 0x3dc   : > { %1348 = vmatprep.mubr.f32.mxu1 %v359_v44 }
 0x3df   : > { %1349 = vmatmul.mubr.f32.gmra.mrb[66].mxu1 %v358_v31 }
 0x3e0   : > { %1354 = vmatprep.mubr.f32.mxu1 %v361_v32 }
 0x3e3   : > { %1355 = vmatmul.mubr.f32.gmra.mrb[68].mxu1 %v360_v21 }
 0x3e4   : > { %1360 = vmatprep.mubr.f32.mxu1 %v363_v22 }
 0x3e7   : > { %1361 = vmatmul.mubr.f32.gmra.mrb[70].mxu1 %v362_v3 }
 0x4ae   : > { %v1273_v4 = vpop.f32.mrb[8].mxu0  ;;  %v1344_v29 = vpop.f32.mrb[64].mxu1 }
 0x4af   : > { %1955 = vrcp.f32 %v1273_v4  ;;  %v1275_v25 = vpop.f32.mrb[9].mxu0  ;;  %v1346_v2 = vpop.f32.mrb[65].mxu1 }
 0x4b0   : > { %1957 = vrcp.f32 %v1275_v25 }
 0x4b2   : > { %v1350_v34 = vpop.f32.mrb[66].mxu1 }
 0x4b3   : > { %v1352_v6 = vpop.f32.mrb[67].mxu1 }
 0x4b6   : > { %v1356_v35 = vpop.f32.mrb[68].mxu1 }
 0x4b7   : > { %v1358_v54 = vpop.f32.mrb[69].mxu1 }
 0x4b9   : > { %v1956_v55 = vpop.eup %1955 }
 0x4ba   : > { %v1958_v5 = vpop.eup %1957  ;;  %v1372_v45 = vrot.slane %v1956_v55, %v1371_v7  ;;  %v1362_v27 = vpop.f32.mrb[70].mxu1 }
 0x4bb   : > { %v1376_v28 = vrot.slane %v1958_v5, %v1371_v7  ;;  %v1364_v46 = vpop.f32.mrb[71].mxu1 }
 0x4bc   : > { %v1377_v57 = vmul.f32 %v1372_v45, %v1344_v29  ;;  %v1379_v58 = vmul.f32 %v1372_v45, %v1350_v34  ;;  %v1381_v30 = vmul.f32 %v1372_v45, %v1356_v35  ;;  %v1383_v33 = vmul.f32 %v1372_v45, %v1362_v27 }
 0x4bd   : > { %v1378_v11 = vmul.f32 %v1376_v28, %v1346_v2  ;;  %v1380_v9 = vmul.f32 %v1376_v28, %v1352_v6  ;;  %v1382_v10 = vmul.f32 %v1376_v28, %v1358_v54  ;;  %v1384_v14 = vmul.f32 %v1376_v28, %v1364_v46 }
 0x4be   : > { %1385 = vst [vmem:[%s337_s9] sm:$0xff] %v1377_v57  ;;  %1387 = vst [vmem:[%s337_s9 + $0x10] sm:$0xff] %v1379_v58 }
 0x4bf   : > { %1389 = vst [vmem:[%s337_s9 + $0x20] sm:$0xff] %v1381_v30  ;;  %1391 = vst [vmem:[%s337_s9 + $0x30] sm:$0xff] %v1383_v33 }
 0x4c0   : > { %1386 = vst [vmem:[%s337_s9 + $0x8] sm:$0xff] %v1378_v11  ;;  %1388 = vst [vmem:[%s337_s9 + $0x18] sm:$0xff] %v1380_v9 }
 0x4c1   : > { %1390 = vst [vmem:[%s337_s9 + $0x28] sm:$0xff] %v1382_v10  ;;  %1392 = vst [vmem:[%s337_s9 + $0x38] sm:$0xff] %v1384_v14 }
 0x4c2   : > { %2062 = shalt.err (!%p2059_p13)
}
 0x4c3   : > { %s2063_s28 = scalar_lea.hbm %s2787_s25, 1024  ;;  %s2067_s1 = scalar_lea.hbm %s2841_s5, 2048 }
 0x4c4   : > { %p2064_p11 = scmp.ne.s32.totalorder %s2787_s25, %s2063_s28  ;;  %p2068_p7 = scmp.lt.u32.totalorder %s2787_s25, %s2841_s5 }
 0x4c5   : > { %p2069_p4 = scmp.lt.u32.totalorder %s2067_s1, %s2063_s28  ;;  %p2071_p0 = scmp.lt.u32.totalorder %s2063_s28, %s2787_s25 }
 0x4c6   : > { %p2065_p2 = pnand %p2064_p11, %p2914_p10 }
 0x4c7   : > { %p2070_p3 = por %p2069_p4, %p2068_p7 }
 0x4c8   : > { %p2066_p5 = pneg %p2065_p2 }
 0x4c9   : > { %p2072_p8 = por %p2071_p0, %p2070_p3 }
 0x4cb   : > { %p2073_p9 = pnand %p2072_p8, %p2066_p5 }
 0x4cd   : > { %2076 = shalt.err (!%p2073_p9)
}
 0x4ce   : > { %s2146_s15 = smov 256   ;;  %s2147_s12 = smov 16  }
 0x4cf   : > { %1752 = dma.vmem_to_hbm [thread:$0]  (%p2914_p10), %s2782_s17, 1024, %s2787_s25, %s1394_s21, %s2146_s15, %s2146_s15, %s2147_s12  }
 0x4d0 PF: > { %s2915_s14 = sld [smem:[#allocation16_spill]]  ;;  %s2916_s27 = sld [smem:[#allocation13_spill]] }
 0x4d1   : > { %s1424_s9 = sand.u32 1, %s2115_s18  }
 0x4d2   : > { %s1425_s24 = scalar_lea.sflag [#allocation4], %s1424_s9 }
 0x4d6   : > { %p2917_p12 = scmp.ne.s32.totalorder %s2915_s14, 0  ;;  %p2918_p1 = scmp.ge.s32.totalorder %s2916_s27, 2 }
 0x4d8   : > { %p1765_p6 = pnand %p2918_p1, %p2917_p12 }
 0x4da   : > { %2110 = dma.done.wait (!%p1765_p6), %s1425_s24, 1024  }
 0x4db   : > { %2112 = vsyncadd (!%p1765_p6), %s1425_s24, 4294966272  ;;  %s24_s23 = sadd.s32 1, %s2916_s27   ;;  %s2919_s30 = sld [smem:[#allocation15_spill]] }
 0x4dc   : > { %p21_p13 = scmp.ge.s32.totalorder %s24_s23, 4   ;;  %s2920_s21 = sld [smem:[#allocation12_spill]] }
 0x4dd   : > { %s2921_s22 = sld [smem:[#allocation14_spill]]  ;;  %s2922_s18 = smov %s2119_s19 }
 0x4de   : > { %s2923_s19 = smov %s2123_s20  ;;  %23 = sbr.rel (!%p21_p13) target bundleno = 10 (0xa), region = 109 }
 0x4e1   : > { %s2924_s20 = smov %s2919_s30 }
 0x4e5   :  { %1430 = vsyncpa [#allocation3], 1 }
 0x4e6   :  { %1432 = vsyncpa [#allocation3 + $0x1], 1 }
 0x4e7   :  { %1433 = vsyncpa [#allocation6], 1 }
 0x4e8   :  { %1435 = vsyncpa [#allocation6 + $0x1], 1 }
 0x4e9   :  { %1436 = vsyncpa [#allocation4], 1 }
 0x4ea   :  { %1438 = vsyncpa [#allocation4 + $0x1], 1 }

</bundles_post_ra>
